<compile_context>
chip_gen: v7x
topology: tpu7x:2x2x1
jax: 0.10.0
libtpu: 0.0.40
codegen_flags: <defaults>
</compile_context>

<pallas_src>
import math
import functools

import jax
import jax.numpy as jnp
from jax.experimental import pallas as pl
from jax.experimental.pallas import tpu as pltpu

LN_EPS = 1e-5  # PyTorch LayerNorm default


def _tile(n, target):
    """Largest divisor of n that is <= target and (a multiple of 8 or == n)."""
    if n <= target:
        return n
    for t in range(target, 0, -1):
        if n % t == 0 and (t % 8 == 0 or t == n):
            return t
    return n


def _vmem_limit(est_bytes):
    # 2x headroom, clamp to [8 MiB, 64 MiB] so the same config fits v7x.
    return int(min(max(2 * est_bytes, 8 << 20), 64 << 20))


# --------------------------------------------------------------------------
# Kernel A: fused attention block (Q/KV proj -> flash attn -> out-proj ->
#           residual add -> LayerNorm1), grid (B, nq, nk)
# --------------------------------------------------------------------------

def _attn_block_kernel(xq_ref, xkv_ref, wq_ref, bq_ref, wkv_ref, bkv_ref,
                       wo_ref, bo_ref, g_ref, b_ref, o_ref,
                       q_sc, m_sc, l_sc, acc_sc, *, nhead):
    tq = xq_ref.shape[1]
    E = xq_ref.shape[2]
    tk = xkv_ref.shape[1]
    dh = E // nhead
    ki = pl.program_id(2)

    @pl.when(ki == 0)
    def _init():
        # Q projection once per query tile (softmax scale folded into wq/bq).
        q = jnp.dot(xq_ref[0].astype(jnp.bfloat16), wq_ref[...],
                    preferred_element_type=jnp.float32) + bq_ref[...]  # (tq, E)
        q_sc[...] = q.reshape(tq, nhead, dh).transpose(1, 0, 2).astype(jnp.bfloat16)
        m_sc[...] = jnp.full_like(m_sc, -jnp.inf)
        l_sc[...] = jnp.zeros_like(l_sc)
        acc_sc[...] = jnp.zeros_like(acc_sc)

    # K/V projection for this KV tile (fused (E, 2E) matmul).
    kv = jnp.dot(xkv_ref[0].astype(jnp.bfloat16), wkv_ref[...],
                 preferred_element_type=jnp.float32) + bkv_ref[...]     # (tk, 2E)
    k = kv[:, :E].reshape(tk, nhead, dh).transpose(1, 0, 2).astype(jnp.bfloat16)
    v = kv[:, E:].reshape(tk, nhead, dh).transpose(1, 0, 2).astype(jnp.bfloat16)

    # Batched per-head matmuls; online softmax with deferred normalization.
    s = jnp.einsum('hqd,hkd->hqk', q_sc[...], k,
                   preferred_element_type=jnp.float32)                  # (h,tq,tk)
    m_new = jnp.maximum(m_sc[...], jnp.max(s, axis=-1, keepdims=True))
    alpha = jnp.exp(m_sc[...] - m_new)
    p = jnp.exp(s - m_new)                                              # unnormalized
    l_sc[...] = alpha * l_sc[...] + jnp.sum(p, axis=-1, keepdims=True)
    pv = jnp.einsum('hqk,hkd->hqd', p.astype(jnp.bfloat16), v,
                    preferred_element_type=jnp.float32)                 # (h,tq,dh)
    acc_sc[...] = alpha * acc_sc[...] + pv
    m_sc[...] = m_new

    @pl.when(ki == pl.num_programs(2) - 1)
    def _finalize():
        attn = acc_sc[...] * pl.reciprocal(l_sc[...], approx=True)      # (h,tq,dh)
        attn = attn.transpose(1, 0, 2).reshape(tq, E)                   # (tq, E)
        out = jnp.dot(attn.astype(jnp.bfloat16), wo_ref[...],
                      preferred_element_type=jnp.float32) + bo_ref[...]
        y = xq_ref[0] + out                                             # residual
        mu = jnp.mean(y, axis=-1, keepdims=True)
        c = y - mu
        var = jnp.mean(c * c, axis=-1, keepdims=True)
        o_ref[0] = (c * jax.lax.rsqrt(var + LN_EPS) * g_ref[...]
                    + b_ref[...]).astype(o_ref.dtype)


def attn_block_pallas(x_bte, p, nhead, *, tq_target=256, tk_target=256):
    """x_bte: (B, T, E) f32. Returns (B, T, E) bf16 (post-LN1)."""
    B, T, E = x_bte.shape
    dh = E // nhead
    tq = _tile(T, tq_target)
    tk = _tile(T, tk_target)
    nq, nk = T // tq, T // tk

    const = dict(pipeline_mode=pl.Buffered(1))   # grid-constant params
    in_specs = [
        pl.BlockSpec((1, tq, E), lambda b, qi, ki: (b, qi, 0)),            # x (query)
        pl.BlockSpec((1, tk, E), lambda b, qi, ki: (b, ki, 0)),            # x (kv)
        pl.BlockSpec((E, E), lambda b, qi, ki: (0, 0), **const),           # wq
        pl.BlockSpec((1, E), lambda b, qi, ki: (0, 0), **const),           # bq
        pl.BlockSpec((E, 2 * E), lambda b, qi, ki: (0, 0), **const),       # wkv
        pl.BlockSpec((1, 2 * E), lambda b, qi, ki: (0, 0), **const),       # bkv
        pl.BlockSpec((E, E), lambda b, qi, ki: (0, 0), **const),           # wo
        pl.BlockSpec((1, E), lambda b, qi, ki: (0, 0), **const),           # bo
        pl.BlockSpec((1, E), lambda b, qi, ki: (0, 0), **const),           # gamma1
        pl.BlockSpec((1, E), lambda b, qi, ki: (0, 0), **const),           # beta1
    ]

    # VMEM estimate: activations double-buffered, weights single-buffered.
    est = (2 * tq * E * 4 + 2 * tk * E * 4
           + E * E * 2 + E * 2 * E * 2 + E * E * 2
           + 8 * E * 4
           + 2 * tq * E * 2
           + nhead * tq * dh * 2 + 2 * nhead * tq * 4 + nhead * tq * dh * 4)

    flops = (2 * B * T * E * E                 # Q proj
             + 2 * B * nq * T * 2 * E * E      # K/V proj (incl. recompute per q-tile)
             + 4 * B * T * T * E               # QK^T + PV
             + 2 * B * T * E * E)              # out proj
    cost = pl.CostEstimate(
        flops=flops,
        transcendentals=B * nhead * T * T + B * T,
        bytes_accessed=B * T * E * 4 * (1 + nq) + B * T * E * 2
                       + 4 * E * E * 2 + 10 * E * 4)

    kernel = functools.partial(_attn_block_kernel, nhead=nhead)
    return pl.pallas_call(
        kernel,
        out_shape=jax.ShapeDtypeStruct((B, T, E), jnp.bfloat16),
        grid=(B, nq, nk),
        in_specs=in_specs,
        out_specs=pl.BlockSpec((1, tq, E), lambda b, qi, ki: (b, qi, 0)),
        scratch_shapes=[
            pltpu.VMEM((nhead, tq, dh), jnp.bfloat16),   # Q tile (per head)
            pltpu.VMEM((nhead, tq, 1), jnp.float32),     # running max
            pltpu.VMEM((nhead, tq, 1), jnp.float32),     # running denom
            pltpu.VMEM((nhead, tq, dh), jnp.float32),    # output accumulator
        ],
        compiler_params=pltpu.CompilerParams(
            dimension_semantics=("parallel", "parallel", "arbitrary"),
            vmem_limit_bytes=_vmem_limit(est)),
        cost_estimate=cost,
    )(x_bte, x_bte, p["wq"], p["bq"], p["wkv"], p["bkv"],
      p["wo"], p["bo"], p["g1"], p["b1"])


# --------------------------------------------------------------------------
# Kernel B: fused FFN block (linear1 -> ReLU -> linear2 -> add & LN2),
#           rows = flattened (B*T), hidden dim F streamed with accumulator
# --------------------------------------------------------------------------

def _ffn_block_kernel(x_ref, w1_ref, b1_ref, w2_ref, b2_ref, g_ref, bb_ref,
                      o_ref, acc_sc):
    fi = pl.program_id(1)

    @pl.when(fi == 0)
    def _init():
        acc_sc[...] = jnp.zeros_like(acc_sc)

    h = jnp.dot(x_ref[...], w1_ref[...],
                preferred_element_type=jnp.float32) + b1_ref[...]        # (tm, tf)
    h = jnp.maximum(h, 0.0)                       # ReLU (dropout = identity)
    acc_sc[...] += jnp.dot(h.astype(jnp.bfloat16), w2_ref[...],
                           preferred_element_type=jnp.float32)           # (tm, E)

    @pl.when(fi == pl.num_programs(1) - 1)
    def _finalize():
        y = x_ref[...].astype(jnp.float32) + acc_sc[...] + b2_ref[...]
        mu = jnp.mean(y, axis=-1, keepdims=True)
        c = y - mu
        var = jnp.mean(c * c, axis=-1, keepdims=True)
        o_ref[...] = (c * jax.lax.rsqrt(var + LN_EPS) * g_ref[...]
                      + bb_ref[...]).astype(o_ref.dtype)


def ffn_block_pallas(x_re, p, *, tm_target=256, tf_target=512):
    """x_re: (R, E) bf16 with R = B*T. Returns (R, E) f32 (post-LN2)."""
    R, E = x_re.shape
    F = p["w1"].shape[1]
    tm = _tile(R, tm_target)
    tf = _tile(F, tf_target)
    nm, nf = R // tm, F // tf

    const = dict(pipeline_mode=pl.Buffered(1))
    in_specs = [
        pl.BlockSpec((tm, E), lambda i, fi: (i, 0)),                      # x
        pl.BlockSpec((E, tf), lambda i, fi: (0, fi)),                     # w1 chunk
        pl.BlockSpec((1, tf), lambda i, fi: (0, fi)),                     # b1 chunk
        pl.BlockSpec((tf, E), lambda i, fi: (fi, 0)),                     # w2 chunk
        pl.BlockSpec((1, E), lambda i, fi: (0, 0), **const),              # b2
        pl.BlockSpec((1, E), lambda i, fi: (0, 0), **const),              # gamma2
        pl.BlockSpec((1, E), lambda i, fi: (0, 0), **const),              # beta2
    ]

    est = (2 * tm * E * 2 + 2 * E * tf * 2 + 2 * tf * 4 + 2 * tf * E * 2
           + 3 * E * 4 + 2 * tm * E * 4 + tm * E * 4)

    cost = pl.CostEstimate(
        flops=4 * R * E * F,
        transcendentals=R,
        bytes_accessed=R * E * 2 + R * E * 4 + 2 * E * F * 2 + (F + 3 * E) * 4)

    return pl.pallas_call(
        _ffn_block_kernel,
        out_shape=jax.ShapeDtypeStruct((R, E), jnp.float32),
        grid=(nm, nf),
        in_specs=in_specs,
        out_specs=pl.BlockSpec((tm, E), lambda i, fi: (i, 0)),
        scratch_shapes=[pltpu.VMEM((tm, E), jnp.float32)],
        compiler_params=pltpu.CompilerParams(
            dimension_semantics=("parallel", "arbitrary"),
            vmem_limit_bytes=_vmem_limit(est)),
        cost_estimate=cost,
    )(x_re, p["w1"], p["bf1"], p["w2"], p["bf2"], p["g2"], p["b2"])


# --------------------------------------------------------------------------
# Parameter prep (one-time: transpose, fold softmax scale, cast to bf16)
# --------------------------------------------------------------------------

def prepare_params(raw, nhead):
    E = raw["norm1_w"].shape[0]
    dh = E // nhead
    scale = 1.0 / math.sqrt(dh)
    f32, bf16 = jnp.float32, jnp.bfloat16
    inw, inb = raw["in_proj_weight"], raw["in_proj_bias"]
    return {
        "wq": (inw[:E].T * scale).astype(bf16),               # (E, E)
        "bq": (inb[:E] * scale).reshape(1, E).astype(f32),
        "wkv": inw[E:].T.astype(bf16),                        # (E, 2E)
        "bkv": inb[E:].reshape(1, 2 * E).astype(f32),
        "wo": raw["out_proj_weight"].T.astype(bf16),
        "bo": raw["out_proj_bias"].reshape(1, E).astype(f32),
        "g1": raw["norm1_w"].reshape(1, E).astype(f32),
        "b1": raw["norm1_b"].reshape(1, E).astype(f32),
        "w1": raw["linear1_w"].T.astype(bf16),
        "bf1": raw["linear1_b"].reshape(1, -1).astype(f32),
        "w2": raw["linear2_w"].T.astype(bf16),
        "bf2": raw["linear2_b"].reshape(1, E).astype(f32),
        "g2": raw["norm2_w"].reshape(1, E).astype(f32),
        "b2": raw["norm2_b"].reshape(1, E).astype(f32),
    }


@functools.partial(jax.jit, static_argnames=("nhead",))
def transformer_encoder_layer_forward(src, params, nhead):
    """src: (T, B, E) f32 (batch_first=False). Post-LN, eval mode."""
    # TODO(synk): for a stacked TransformerEncoder keep activations in
    # (B, T, E) across layers and transpose only once at model entry/exit.
    x = jnp.transpose(src, (1, 0, 2))                        # (B, T, E)
    B, T, E = x.shape
    a = attn_block_pallas(x, params, nhead)                  # (B, T, E) bf16
    y = ffn_block_pallas(a.reshape(B * T, E), params)        # (B*T, E) f32
    return jnp.transpose(y.reshape(B, T, E), (1, 0, 2))      # (T, B, E)


# --------------------------------------------------------------------------
# Pure-JAX f32 reference (PyTorch semantics) for a correctness sanity check
# --------------------------------------------------------------------------

def reference_forward(src, raw, nhead):
    T, B, E = src.shape
    dh = E // nhead
    scale = 1.0 / math.sqrt(dh)
    inw, inb = raw["in_proj_weight"], raw["in_proj_bias"]
    x = src
    q = x @ inw[:E].T + inb[:E]
    k = x @ inw[E:2 * E].T + inb[E:2 * E]
    v = x @ inw[2 * E:].T + inb[2 * E:]

    def split(a):
        return a.reshape(T, B * nhead, dh).transpose(1, 0, 2)

    qh, kh, vh = split(q), split(k), split(v)
    s = jnp.einsum('btd,bsd->bts', qh, kh) * scale
    p = jax.nn.softmax(s, axis=-1)
    o = jnp.einsum('bts,bsd->btd', p, vh)
    o = o.transpose(1, 0, 2).reshape(T, B, E)
    o = o @ raw["out_proj_weight"].T + raw["out_proj_bias"]

    def ln(y, g, b):
        m = y.mean(-1, keepdims=True)
        var = ((y - m) ** 2).mean(-1, keepdims=True)
        return (y - m) / jnp.sqrt(var + LN_EPS) * g + b

    x = ln(x + o, raw["norm1_w"], raw["norm1_b"])
    h = jnp.maximum(x @ raw["linear1_w"].T + raw["linear1_b"], 0.0)
    f = h @ raw["linear2_w"].T + raw["linear2_b"]
    return ln(x + f, raw["norm2_w"], raw["norm2_b"])


# --------------------------------------------------------------------------
# Example run
# --------------------------------------------------------------------------

if __name__ == "__main__":
    T, B = 8, 2                 # seq len, batch
    E, NHEAD, DIM_FF = 32, 4, 64

    root = jax.random.PRNGKey(0)
    k_src, *ks = jax.random.split(root, 13)
    n = lambda k, shape, s=0.05: s * jax.random.normal(k, shape, jnp.float32)

    raw = {
        "in_proj_weight": n(ks[0], (3 * E, E)),
        "in_proj_bias":   n(ks[1], (3 * E,)),
        "out_proj_weight": n(ks[2], (E, E)),
        "out_proj_bias":   n(ks[3], (E,)),
        "linear1_w": n(ks[4], (DIM_FF, E)),
        "linear1_b": n(ks[5], (DIM_FF,)),
        "linear2_w": n(ks[6], (E, DIM_FF)),
        "linear2_b": n(ks[7], (E,)),
        "norm1_w": jnp.ones((E,), jnp.float32) + n(ks[8], (E,)),
        "norm1_b": n(ks[9], (E,)),
        "norm2_w": jnp.ones((E,), jnp.float32) + n(ks[10], (E,)),
        "norm2_b": n(ks[11], (E,)),
    }
    src = jax.random.normal(k_src, (T, B, E), jnp.float32)

    params = prepare_params(raw, NHEAD)
    out = transformer_encoder_layer_forward(src, params, NHEAD)
    out = jax.block_until_ready(out)

    assert out.shape == (T, B, E) and out.dtype == jnp.float32
    assert bool(jnp.all(jnp.isfinite(out)))

    ref = reference_forward(src, raw, NHEAD)
    max_err = float(jnp.max(jnp.abs(out - ref)))
    assert max_err < 5e-2, f"max abs err vs f32 reference: {max_err}"

    print("KERNEL_OK")
</pallas_src>

<mosaic_0001>
module attributes {stable_mosaic.version = 11 : i64} {
  func.func @_attn_block_kernel(%arg0: i32, %arg1: i32, %arg2: i32, %arg3: memref<1x8x32xf32, #tpu.memory_space<vmem>>, %arg4: memref<1x8x32xf32, #tpu.memory_space<vmem>>, %arg5: memref<32x32xbf16, #tpu.memory_space<vmem>>, %arg6: memref<1x32xf32, #tpu.memory_space<vmem>>, %arg7: memref<32x64xbf16, #tpu.memory_space<vmem>>, %arg8: memref<1x64xf32, #tpu.memory_space<vmem>>, %arg9: memref<32x32xbf16, #tpu.memory_space<vmem>>, %arg10: memref<1x32xf32, #tpu.memory_space<vmem>>, %arg11: memref<1x32xf32, #tpu.memory_space<vmem>>, %arg12: memref<1x32xf32, #tpu.memory_space<vmem>>, %arg13: memref<1x8x32xbf16, #tpu.memory_space<vmem>>, %arg14: memref<4x8x8xbf16, #tpu.memory_space<vmem>>, %arg15: memref<4x8x1xf32, #tpu.memory_space<vmem>>, %arg16: memref<4x8x1xf32, #tpu.memory_space<vmem>>, %arg17: memref<4x8x8xf32, #tpu.memory_space<vmem>>) attributes {dimension_semantics = [#tpu.dimension_semantics<parallel>, #tpu.dimension_semantics<parallel>, #tpu.dimension_semantics<arbitrary>], iteration_bounds = array<i64: 2, 1, 1>, scalar_prefetch = 0 : i64, scratch_operands = 4 : i64, tpu.core_type = #tpu.core_type<tc>, window_params = [{transform_indices = @transform_0, window_bounds = array<i64: 1, 8, 32>}, {transform_indices = @transform_1, window_bounds = array<i64: 1, 8, 32>}, {pipeline_mode = #tpu.pipeline_mode<synchronous>, transform_indices = @transform_2, window_bounds = array<i64: 32, 32>}, {pipeline_mode = #tpu.pipeline_mode<synchronous>, transform_indices = @transform_3, window_bounds = array<i64: 1, 32>}, {pipeline_mode = #tpu.pipeline_mode<synchronous>, transform_indices = @transform_4, window_bounds = array<i64: 32, 64>}, {pipeline_mode = #tpu.pipeline_mode<synchronous>, transform_indices = @transform_5, window_bounds = array<i64: 1, 64>}, {pipeline_mode = #tpu.pipeline_mode<synchronous>, transform_indices = @transform_6, window_bounds = array<i64: 32, 32>}, {pipeline_mode = #tpu.pipeline_mode<synchronous>, transform_indices = @transform_7, window_bounds = array<i64: 1, 32>}, {pipeline_mode = #tpu.pipeline_mode<synchronous>, transform_indices = @transform_8, window_bounds = array<i64: 1, 32>}, {pipeline_mode = #tpu.pipeline_mode<synchronous>, transform_indices = @transform_9, window_bounds = array<i64: 1, 32>}, {transform_indices = @transform_10, window_bounds = array<i64: 1, 8, 32>}]} {
    %c0_i32 = arith.constant 0 : i32
    %0 = arith.cmpi eq, %arg2, %c0_i32 : i32
    %1 = arith.extui %0 : i1 to i32
    %c0_i32_0 = arith.constant 0 : i32
    %2 = arith.cmpi ne, %1, %c0_i32_0 : i32
    scf.if %2 {
      %c0_37 = arith.constant 0 : index
      %c0_38 = arith.constant 0 : index
      %c0_39 = arith.constant 0 : index
      %48 = vector.load %arg3[%c0_37, %c0_38, %c0_39] : memref<1x8x32xf32, #tpu.memory_space<vmem>>, vector<1x8x32xf32>
      %49 = vector.shape_cast %48 : vector<1x8x32xf32> to vector<8x32xf32>
      %50 = arith.truncf %49 : vector<8x32xf32> to vector<8x32xbf16>
      %c0_40 = arith.constant 0 : index
      %c0_41 = arith.constant 0 : index
      %51 = vector.load %arg5[%c0_40, %c0_41] : memref<32x32xbf16, #tpu.memory_space<vmem>>, vector<32x32xbf16>
      %cst_42 = arith.constant dense<0.000000e+00> : vector<8x32xf32>
      %52 = tpu.matmul %50, %51, %cst_42 {dimension_numbers = #tpu.dot_dimension_numbers<[1], [0], [0], [1], [0, 0, 1, 1], [], []>} : vector<8x32xbf16>, vector<32x32xbf16>, vector<8x32xf32> -> vector<8x32xf32>
      %c0_43 = arith.constant 0 : index
      %c0_44 = arith.constant 0 : index
      %53 = vector.load %arg6[%c0_43, %c0_44] : memref<1x32xf32, #tpu.memory_space<vmem>>, vector<1x32xf32>
      %54 = vector.broadcast %53 : vector<1x32xf32> to vector<8x32xf32>
      %55 = arith.addf %52, %54 : vector<8x32xf32>
      %56 = vector.shape_cast %55 : vector<8x32xf32> to vector<8x4x8xf32>
      %57 = tpu.transpose %56, [1, 0, 2] : vector<8x4x8xf32> -> vector<4x8x8xf32>
      %58 = arith.truncf %57 : vector<4x8x8xf32> to vector<4x8x8xbf16>
      %c0_45 = arith.constant 0 : index
      %c0_46 = arith.constant 0 : index
      %c0_47 = arith.constant 0 : index
      %59 = vector.load %arg14[%c0_45, %c0_46, %c0_47] : memref<4x8x8xbf16, #tpu.memory_space<vmem>>, vector<4x8x8xbf16>
      tpu.vector_store %arg14[%c0_45, %c0_46, %c0_47], %58 {strides = array<i32>} : memref<4x8x8xbf16, #tpu.memory_space<vmem>>, vector<4x8x8xbf16>,
      %cst_48 = arith.constant 0xFF800000 : f32
      %60 = vector.broadcast %cst_48 : f32 to vector<4x8x1xf32>
      %c0_49 = arith.constant 0 : index
      %c0_50 = arith.constant 0 : index
      %c0_51 = arith.constant 0 : index
      %61 = vector.load %arg15[%c0_49, %c0_50, %c0_51] : memref<4x8x1xf32, #tpu.memory_space<vmem>>, vector<4x8x1xf32>
      tpu.vector_store %arg15[%c0_49, %c0_50, %c0_51], %60 {strides = array<i32>} : memref<4x8x1xf32, #tpu.memory_space<vmem>>, vector<4x8x1xf32>,
      %cst_52 = arith.constant 0.000000e+00 : f32
      %62 = vector.broadcast %cst_52 : f32 to vector<4x8x1xf32>
      %c0_53 = arith.constant 0 : index
      %c0_54 = arith.constant 0 : index
      %c0_55 = arith.constant 0 : index
      %63 = vector.load %arg16[%c0_53, %c0_54, %c0_55] : memref<4x8x1xf32, #tpu.memory_space<vmem>>, vector<4x8x1xf32>
      tpu.vector_store %arg16[%c0_53, %c0_54, %c0_55], %62 {strides = array<i32>} : memref<4x8x1xf32, #tpu.memory_space<vmem>>, vector<4x8x1xf32>,
      %cst_56 = arith.constant 0.000000e+00 : f32
      %64 = vector.broadcast %cst_56 : f32 to vector<4x8x8xf32>
      %c0_57 = arith.constant 0 : index
      %c0_58 = arith.constant 0 : index
      %c0_59 = arith.constant 0 : index
      %65 = vector.load %arg17[%c0_57, %c0_58, %c0_59] : memref<4x8x8xf32, #tpu.memory_space<vmem>>, vector<4x8x8xf32>
      tpu.vector_store %arg17[%c0_57, %c0_58, %c0_59], %64 {strides = array<i32>} : memref<4x8x8xf32, #tpu.memory_space<vmem>>, vector<4x8x8xf32>,
    } else {
    }
    %c0 = arith.constant 0 : index
    %c0_1 = arith.constant 0 : index
    %c0_2 = arith.constant 0 : index
    %3 = vector.load %arg4[%c0, %c0_1, %c0_2] : memref<1x8x32xf32, #tpu.memory_space<vmem>>, vector<1x8x32xf32>
    %4 = vector.shape_cast %3 : vector<1x8x32xf32> to vector<8x32xf32>
    %5 = arith.truncf %4 : vector<8x32xf32> to vector<8x32xbf16>
    %c0_3 = arith.constant 0 : index
    %c0_4 = arith.constant 0 : index
    %6 = vector.load %arg7[%c0_3, %c0_4] : memref<32x64xbf16, #tpu.memory_space<vmem>>, vector<32x64xbf16>
    %cst = arith.constant dense<0.000000e+00> : vector<8x64xf32>
    %7 = tpu.matmul %5, %6, %cst {dimension_numbers = #tpu.dot_dimension_numbers<[1], [0], [0], [1], [0, 0, 1, 1], [], []>} : vector<8x32xbf16>, vector<32x64xbf16>, vector<8x64xf32> -> vector<8x64xf32>
    %c0_5 = arith.constant 0 : index
    %c0_6 = arith.constant 0 : index
    %8 = vector.load %arg8[%c0_5, %c0_6] : memref<1x64xf32, #tpu.memory_space<vmem>>, vector<1x64xf32>
    %9 = vector.broadcast %8 : vector<1x64xf32> to vector<8x64xf32>
    %10 = arith.addf %7, %9 : vector<8x64xf32>
    %11 = vector.extract_strided_slice %10 {offsets = [0, 0], sizes = [8, 32], strides = [1, 1]} : vector<8x64xf32> to vector<8x32xf32>
    %12 = vector.shape_cast %11 : vector<8x32xf32> to vector<8x4x8xf32>
    %13 = tpu.transpose %12, [1, 0, 2] : vector<8x4x8xf32> -> vector<4x8x8xf32>
    %14 = arith.truncf %13 : vector<4x8x8xf32> to vector<4x8x8xbf16>
    %15 = vector.extract_strided_slice %10 {offsets = [0, 32], sizes = [8, 32], strides = [1, 1]} : vector<8x64xf32> to vector<8x32xf32>
    %16 = vector.shape_cast %15 : vector<8x32xf32> to vector<8x4x8xf32>
    %17 = tpu.transpose %16, [1, 0, 2] : vector<8x4x8xf32> -> vector<4x8x8xf32>
    %18 = arith.truncf %17 : vector<4x8x8xf32> to vector<4x8x8xbf16>
    %c0_7 = arith.constant 0 : index
    %c0_8 = arith.constant 0 : index
    %c0_9 = arith.constant 0 : index
    %19 = vector.load %arg14[%c0_7, %c0_8, %c0_9] : memref<4x8x8xbf16, #tpu.memory_space<vmem>>, vector<4x8x8xbf16>
    "tpu.trace_start"() <{level = 10 : i32, message = "hqd,hkd->hqk"}> : () -> ()
    %cst_10 = arith.constant dense<0.000000e+00> : vector<4x8x8xf32>
    %20 = tpu.matmul %19, %14, %cst_10 {dimension_numbers = #tpu.dot_dimension_numbers<[2], [2], [1], [1], [0, 0, 0, 1, 1, 1], [0], [0]>} : vector<4x8x8xbf16>, vector<4x8x8xbf16>, vector<4x8x8xf32> -> vector<4x8x8xf32>
    "tpu.trace_stop"() : () -> ()
    %c0_11 = arith.constant 0 : index
    %c0_12 = arith.constant 0 : index
    %c0_13 = arith.constant 0 : index
    %21 = vector.load %arg15[%c0_11, %c0_12, %c0_13] : memref<4x8x1xf32, #tpu.memory_space<vmem>>, vector<4x8x1xf32>
    %cst_14 = arith.constant dense<0xFF800000> : vector<4x8xf32>
    %22 = vector.multi_reduction <maximumf>, %20, %cst_14 [2] : vector<4x8x8xf32> to vector<4x8xf32>
    %23 = vector.shape_cast %22 : vector<4x8xf32> to vector<4x8x1xf32>
    %24 = arith.maximumf %21, %23 : vector<4x8x1xf32>
    %c0_15 = arith.constant 0 : index
    %c0_16 = arith.constant 0 : index
    %c0_17 = arith.constant 0 : index
    %25 = vector.load %arg15[%c0_15, %c0_16, %c0_17] : memref<4x8x1xf32, #tpu.memory_space<vmem>>, vector<4x8x1xf32>
    %26 = arith.subf %25, %24 : vector<4x8x1xf32>
    %27 = math.exp %26 : vector<4x8x1xf32>
    %28 = vector.broadcast %24 : vector<4x8x1xf32> to vector<4x8x8xf32>
    %29 = arith.subf %20, %28 : vector<4x8x8xf32>
    %30 = math.exp %29 : vector<4x8x8xf32>
    %c0_18 = arith.constant 0 : index
    %c0_19 = arith.constant 0 : index
    %c0_20 = arith.constant 0 : index
    %31 = vector.load %arg16[%c0_18, %c0_19, %c0_20] : memref<4x8x1xf32, #tpu.memory_space<vmem>>, vector<4x8x1xf32>
    %32 = arith.mulf %27, %31 : vector<4x8x1xf32>
    %cst_21 = arith.constant dense<0.000000e+00> : vector<4x8xf32>
    %33 = vector.multi_reduction <add>, %30, %cst_21 [2] : vector<4x8x8xf32> to vector<4x8xf32>
    %34 = vector.shape_cast %33 : vector<4x8xf32> to vector<4x8x1xf32>
    %35 = arith.addf %32, %34 : vector<4x8x1xf32>
    %c0_22 = arith.constant 0 : index
    %c0_23 = arith.constant 0 : index
    %c0_24 = arith.constant 0 : index
    %36 = vector.load %arg16[%c0_22, %c0_23, %c0_24] : memref<4x8x1xf32, #tpu.memory_space<vmem>>, vector<4x8x1xf32>
    tpu.vector_store %arg16[%c0_22, %c0_23, %c0_24], %35 {strides = array<i32>} : memref<4x8x1xf32, #tpu.memory_space<vmem>>, vector<4x8x1xf32>,
    %37 = arith.truncf %30 : vector<4x8x8xf32> to vector<4x8x8xbf16>
    "tpu.trace_start"() <{level = 10 : i32, message = "hqk,hkd->hqd"}> : () -> ()
    %cst_25 = arith.constant dense<0.000000e+00> : vector<4x8x8xf32>
    %38 = tpu.matmul %37, %18, %cst_25 {dimension_numbers = #tpu.dot_dimension_numbers<[2], [1], [1], [2], [0, 0, 0, 1, 1, 2], [0], [0]>} : vector<4x8x8xbf16>, vector<4x8x8xbf16>, vector<4x8x8xf32> -> vector<4x8x8xf32>
    "tpu.trace_stop"() : () -> ()
    %c0_26 = arith.constant 0 : index
    %c0_27 = arith.constant 0 : index
    %c0_28 = arith.constant 0 : index
    %39 = vector.load %arg17[%c0_26, %c0_27, %c0_28] : memref<4x8x8xf32, #tpu.memory_space<vmem>>, vector<4x8x8xf32>
    %40 = vector.broadcast %27 : vector<4x8x1xf32> to vector<4x8x8xf32>
    %41 = arith.mulf %40, %39 : vector<4x8x8xf32>
    %42 = arith.addf %41, %38 : vector<4x8x8xf32>
    %c0_29 = arith.constant 0 : index
    %c0_30 = arith.constant 0 : index
    %c0_31 = arith.constant 0 : index
    %43 = vector.load %arg17[%c0_29, %c0_30, %c0_31] : memref<4x8x8xf32, #tpu.memory_space<vmem>>, vector<4x8x8xf32>
    tpu.vector_store %arg17[%c0_29, %c0_30, %c0_31], %42 {strides = array<i32>} : memref<4x8x8xf32, #tpu.memory_space<vmem>>, vector<4x8x8xf32>,
    %c0_32 = arith.constant 0 : index
    %c0_33 = arith.constant 0 : index
    %c0_34 = arith.constant 0 : index
    %44 = vector.load %arg15[%c0_32, %c0_33, %c0_34] : memref<4x8x1xf32, #tpu.memory_space<vmem>>, vector<4x8x1xf32>
    tpu.vector_store %arg15[%c0_32, %c0_33, %c0_34], %24 {strides = array<i32>} : memref<4x8x1xf32, #tpu.memory_space<vmem>>, vector<4x8x1xf32>,
    %c0_i32_35 = arith.constant 0 : i32
    %45 = arith.cmpi eq, %arg2, %c0_i32_35 : i32
    %46 = arith.extui %45 : i1 to i32
    %c0_i32_36 = arith.constant 0 : i32
    %47 = arith.cmpi ne, %46, %c0_i32_36 : i32
    scf.if %47 {
      %c0_37 = arith.constant 0 : index
      %c0_38 = arith.constant 0 : index
      %c0_39 = arith.constant 0 : index
      %48 = vector.load %arg17[%c0_37, %c0_38, %c0_39] : memref<4x8x8xf32, #tpu.memory_space<vmem>>, vector<4x8x8xf32>
      %c0_40 = arith.constant 0 : index
      %c0_41 = arith.constant 0 : index
      %c0_42 = arith.constant 0 : index
      %49 = vector.load %arg16[%c0_40, %c0_41, %c0_42] : memref<4x8x1xf32, #tpu.memory_space<vmem>>, vector<4x8x1xf32>
      %50 = tpu.reciprocal %49 {approx = true} : vector<4x8x1xf32> -> vector<4x8x1xf32>
      %51 = vector.broadcast %50 : vector<4x8x1xf32> to vector<4x8x8xf32>
      %52 = arith.mulf %48, %51 : vector<4x8x8xf32>
      %53 = tpu.transpose %52, [1, 0, 2] : vector<4x8x8xf32> -> vector<8x4x8xf32>
      %54 = vector.shape_cast %53 : vector<8x4x8xf32> to vector<8x32xf32>
      %55 = arith.truncf %54 : vector<8x32xf32> to vector<8x32xbf16>
      %c0_43 = arith.constant 0 : index
      %c0_44 = arith.constant 0 : index
      %56 = vector.load %arg9[%c0_43, %c0_44] : memref<32x32xbf16, #tpu.memory_space<vmem>>, vector<32x32xbf16>
      %cst_45 = arith.constant dense<0.000000e+00> : vector<8x32xf32>
      %57 = tpu.matmul %55, %56, %cst_45 {dimension_numbers = #tpu.dot_dimension_numbers<[1], [0], [0], [1], [0, 0, 1, 1], [], []>} : vector<8x32xbf16>, vector<32x32xbf16>, vector<8x32xf32> -> vector<8x32xf32>
      %c0_46 = arith.constant 0 : index
      %c0_47 = arith.constant 0 : index
      %58 = vector.load %arg10[%c0_46, %c0_47] : memref<1x32xf32, #tpu.memory_space<vmem>>, vector<1x32xf32>
      %59 = vector.broadcast %58 : vector<1x32xf32> to vector<8x32xf32>
      %60 = arith.addf %57, %59 : vector<8x32xf32>
      %c0_48 = arith.constant 0 : index
      %c0_49 = arith.constant 0 : index
      %c0_50 = arith.constant 0 : index
      %61 = vector.load %arg3[%c0_48, %c0_49, %c0_50] : memref<1x8x32xf32, #tpu.memory_space<vmem>>, vector<1x8x32xf32>
      %62 = vector.shape_cast %61 : vector<1x8x32xf32> to vector<8x32xf32>
      %63 = arith.addf %62, %60 : vector<8x32xf32>
      %cst_51 = arith.constant dense<0.000000e+00> : vector<8xf32>
      %64 = vector.multi_reduction <add>, %63, %cst_51 [1] : vector<8x32xf32> to vector<8xf32>
      %65 = vector.shape_cast %64 : vector<8xf32> to vector<8x1xf32>
      %cst_52 = arith.constant 3.200000e+01 : f32
      %66 = vector.broadcast %cst_52 : f32 to vector<8x1xf32>
      %67 = arith.divf %65, %66 : vector<8x1xf32>
      %68 = vector.broadcast %67 : vector<8x1xf32> to vector<8x32xf32>
      %69 = arith.subf %63, %68 : vector<8x32xf32>
      %70 = arith.mulf %69, %69 : vector<8x32xf32>
      %cst_53 = arith.constant dense<0.000000e+00> : vector<8xf32>
      %71 = vector.multi_reduction <add>, %70, %cst_53 [1] : vector<8x32xf32> to vector<8xf32>
      %72 = vector.shape_cast %71 : vector<8xf32> to vector<8x1xf32>
      %cst_54 = arith.constant 3.200000e+01 : f32
      %73 = vector.broadcast %cst_54 : f32 to vector<8x1xf32>
      %74 = arith.divf %72, %73 : vector<8x1xf32>
      %cst_55 = arith.constant 9.99999974E-6 : f32
      %75 = vector.broadcast %cst_55 : f32 to vector<8x1xf32>
      %76 = arith.addf %74, %75 : vector<8x1xf32>
      %77 = math.rsqrt %76 : vector<8x1xf32>
      %78 = vector.broadcast %77 : vector<8x1xf32> to vector<8x32xf32>
      %79 = arith.mulf %69, %78 : vector<8x32xf32>
      %c0_56 = arith.constant 0 : index
      %c0_57 = arith.constant 0 : index
      %80 = vector.load %arg11[%c0_56, %c0_57] : memref<1x32xf32, #tpu.memory_space<vmem>>, vector<1x32xf32>
      %81 = vector.broadcast %80 : vector<1x32xf32> to vector<8x32xf32>
      %82 = arith.mulf %79, %81 : vector<8x32xf32>
      %c0_58 = arith.constant 0 : index
      %c0_59 = arith.constant 0 : index
      %83 = vector.load %arg12[%c0_58, %c0_59] : memref<1x32xf32, #tpu.memory_space<vmem>>, vector<1x32xf32>
      %84 = vector.broadcast %83 : vector<1x32xf32> to vector<8x32xf32>
      %85 = arith.addf %82, %84 : vector<8x32xf32>
      %86 = arith.truncf %85 : vector<8x32xf32> to vector<8x32xbf16>
      %c0_60 = arith.constant 0 : index
      %c0_61 = arith.constant 0 : index
      %c0_62 = arith.constant 0 : index
      %87 = vector.load %arg13[%c0_60, %c0_61, %c0_62] : memref<1x8x32xbf16, #tpu.memory_space<vmem>>, vector<1x8x32xbf16>
      %88 = vector.shape_cast %87 : vector<1x8x32xbf16> to vector<8x32xbf16>
      %89 = vector.shape_cast %86 : vector<8x32xbf16> to vector<1x8x32xbf16>
      tpu.vector_store %arg13[%c0_60, %c0_61, %c0_62], %89 {strides = array<i32>} : memref<1x8x32xbf16, #tpu.memory_space<vmem>>, vector<1x8x32xbf16>,
    } else {
    }
    return
  }
  func.func @transform_0(%arg0: i32, %arg1: i32, %arg2: i32) -> (i32, i32, i32) {
    %c0_i32 = arith.constant 0 : i32
    %c0_i32_0 = arith.constant 0 : i32
    return %arg0, %arg1, %c0_i32 : i32, i32, i32
  }
  func.func @transform_1(%arg0: i32, %arg1: i32, %arg2: i32) -> (i32, i32, i32) {
    %c0_i32 = arith.constant 0 : i32
    %c0_i32_0 = arith.constant 0 : i32
    return %arg0, %arg2, %c0_i32 : i32, i32, i32
  }
  func.func @transform_2(%arg0: i32, %arg1: i32, %arg2: i32) -> (i32, i32) {
    %c0_i32 = arith.constant 0 : i32
    %c0_i32_0 = arith.constant 0 : i32
    %c0_i32_1 = arith.constant 0 : i32
    return %c0_i32, %c0_i32_0 : i32, i32
  }
  func.func @transform_3(%arg0: i32, %arg1: i32, %arg2: i32) -> (i32, i32) {
    %c0_i32 = arith.constant 0 : i32
    %c0_i32_0 = arith.constant 0 : i32
    %c0_i32_1 = arith.constant 0 : i32
    return %c0_i32, %c0_i32_0 : i32, i32
  }
  func.func @transform_4(%arg0: i32, %arg1: i32, %arg2: i32) -> (i32, i32) {
    %c0_i32 = arith.constant 0 : i32
    %c0_i32_0 = arith.constant 0 : i32
    %c0_i32_1 = arith.constant 0 : i32
    return %c0_i32, %c0_i32_0 : i32, i32
  }
  func.func @transform_5(%arg0: i32, %arg1: i32, %arg2: i32) -> (i32, i32) {
    %c0_i32 = arith.constant 0 : i32
    %c0_i32_0 = arith.constant 0 : i32
    %c0_i32_1 = arith.constant 0 : i32
    return %c0_i32, %c0_i32_0 : i32, i32
  }
  func.func @transform_6(%arg0: i32, %arg1: i32, %arg2: i32) -> (i32, i32) {
    %c0_i32 = arith.constant 0 : i32
    %c0_i32_0 = arith.constant 0 : i32
    %c0_i32_1 = arith.constant 0 : i32
    return %c0_i32, %c0_i32_0 : i32, i32
  }
  func.func @transform_7(%arg0: i32, %arg1: i32, %arg2: i32) -> (i32, i32) {
    %c0_i32 = arith.constant 0 : i32
    %c0_i32_0 = arith.constant 0 : i32
    %c0_i32_1 = arith.constant 0 : i32
    return %c0_i32, %c0_i32_0 : i32, i32
  }
  func.func @transform_8(%arg0: i32, %arg1: i32, %arg2: i32) -> (i32, i32) {
    %c0_i32 = arith.constant 0 : i32
    %c0_i32_0 = arith.constant 0 : i32
    %c0_i32_1 = arith.constant 0 : i32
    return %c0_i32, %c0_i32_0 : i32, i32
  }
  func.func @transform_9(%arg0: i32, %arg1: i32, %arg2: i32) -> (i32, i32) {
    %c0_i32 = arith.constant 0 : i32
    %c0_i32_0 = arith.constant 0 : i32
    %c0_i32_1 = arith.constant 0 : i32
    return %c0_i32, %c0_i32_0 : i32, i32
  }
  func.func @transform_10(%arg0: i32, %arg1: i32, %arg2: i32) -> (i32, i32, i32) {
    %c0_i32 = arith.constant 0 : i32
    %c0_i32_0 = arith.constant 0 : i32
    return %arg0, %arg1, %c0_i32 : i32, i32, i32
  }
}

module attributes {stable_mosaic.version = 11 : i64} {
  func.func @_ffn_block_kernel(%arg0: i32, %arg1: i32, %arg2: memref<16x32xbf16, #tpu.memory_space<vmem>>, %arg3: memref<32x64xbf16, #tpu.memory_space<vmem>>, %arg4: memref<1x64xf32, #tpu.memory_space<vmem>>, %arg5: memref<64x32xbf16, #tpu.memory_space<vmem>>, %arg6: memref<1x32xf32, #tpu.memory_space<vmem>>, %arg7: memref<1x32xf32, #tpu.memory_space<vmem>>, %arg8: memref<1x32xf32, #tpu.memory_space<vmem>>, %arg9: memref<16x32xf32, #tpu.memory_space<vmem>>, %arg10: memref<16x32xf32, #tpu.memory_space<vmem>>) attributes {dimension_semantics = [#tpu.dimension_semantics<parallel>, #tpu.dimension_semantics<arbitrary>], iteration_bounds = array<i64: 1, 1>, scalar_prefetch = 0 : i64, scratch_operands = 1 : i64, tpu.core_type = #tpu.core_type<tc>, window_params = [{transform_indices = @transform_0, window_bounds = array<i64: 16, 32>}, {transform_indices = @transform_1, window_bounds = array<i64: 32, 64>}, {transform_indices = @transform_2, window_bounds = array<i64: 1, 64>}, {transform_indices = @transform_3, window_bounds = array<i64: 64, 32>}, {pipeline_mode = #tpu.pipeline_mode<synchronous>, transform_indices = @transform_4, window_bounds = array<i64: 1, 32>}, {pipeline_mode = #tpu.pipeline_mode<synchronous>, transform_indices = @transform_5, window_bounds = array<i64: 1, 32>}, {pipeline_mode = #tpu.pipeline_mode<synchronous>, transform_indices = @transform_6, window_bounds = array<i64: 1, 32>}, {transform_indices = @transform_7, window_bounds = array<i64: 16, 32>}]} {
    %c0_i32 = arith.constant 0 : i32
    %0 = arith.cmpi eq, %arg1, %c0_i32 : i32
    %1 = arith.extui %0 : i1 to i32
    %c0_i32_0 = arith.constant 0 : i32
    %2 = arith.cmpi ne, %1, %c0_i32_0 : i32
    scf.if %2 {
      %cst_16 = arith.constant 0.000000e+00 : f32
      %20 = vector.broadcast %cst_16 : f32 to vector<16x32xf32>
      %c0_17 = arith.constant 0 : index
      %c0_18 = arith.constant 0 : index
      %21 = vector.load %arg10[%c0_17, %c0_18] : memref<16x32xf32, #tpu.memory_space<vmem>>, vector<16x32xf32>
      tpu.vector_store %arg10[%c0_17, %c0_18], %20 {strides = array<i32>} : memref<16x32xf32, #tpu.memory_space<vmem>>, vector<16x32xf32>,
    } else {
    }
    %c0 = arith.constant 0 : index
    %c0_1 = arith.constant 0 : index
    %3 = vector.load %arg2[%c0, %c0_1] : memref<16x32xbf16, #tpu.memory_space<vmem>>, vector<16x32xbf16>
    %c0_2 = arith.constant 0 : index
    %c0_3 = arith.constant 0 : index
    %4 = vector.load %arg3[%c0_2, %c0_3] : memref<32x64xbf16, #tpu.memory_space<vmem>>, vector<32x64xbf16>
    %cst = arith.constant dense<0.000000e+00> : vector<16x64xf32>
    %5 = tpu.matmul %3, %4, %cst {dimension_numbers = #tpu.dot_dimension_numbers<[1], [0], [0], [1], [0, 0, 1, 1], [], []>} : vector<16x32xbf16>, vector<32x64xbf16>, vector<16x64xf32> -> vector<16x64xf32>
    %c0_4 = arith.constant 0 : index
    %c0_5 = arith.constant 0 : index
    %6 = vector.load %arg4[%c0_4, %c0_5] : memref<1x64xf32, #tpu.memory_space<vmem>>, vector<1x64xf32>
    %7 = vector.broadcast %6 : vector<1x64xf32> to vector<16x64xf32>
    %8 = arith.addf %5, %7 : vector<16x64xf32>
    %cst_6 = arith.constant 0.000000e+00 : f32
    %9 = vector.broadcast %cst_6 : f32 to vector<16x64xf32>
    %10 = arith.maximumf %8, %9 : vector<16x64xf32>
    %c0_7 = arith.constant 0 : index
    %c0_8 = arith.constant 0 : index
    %11 = vector.load %arg10[%c0_7, %c0_8] : memref<16x32xf32, #tpu.memory_space<vmem>>, vector<16x32xf32>
    %12 = arith.truncf %10 : vector<16x64xf32> to vector<16x64xbf16>
    %c0_9 = arith.constant 0 : index
    %c0_10 = arith.constant 0 : index
    %13 = vector.load %arg5[%c0_9, %c0_10] : memref<64x32xbf16, #tpu.memory_space<vmem>>, vector<64x32xbf16>
    %cst_11 = arith.constant dense<0.000000e+00> : vector<16x32xf32>
    %14 = tpu.matmul %12, %13, %cst_11 {dimension_numbers = #tpu.dot_dimension_numbers<[1], [0], [0], [1], [0, 0, 1, 1], [], []>} : vector<16x64xbf16>, vector<64x32xbf16>, vector<16x32xf32> -> vector<16x32xf32>
    %15 = arith.addf %11, %14 : vector<16x32xf32>
    %c0_12 = arith.constant 0 : index
    %c0_13 = arith.constant 0 : index
    %16 = vector.load %arg10[%c0_12, %c0_13] : memref<16x32xf32, #tpu.memory_space<vmem>>, vector<16x32xf32>
    tpu.vector_store %arg10[%c0_12, %c0_13], %15 {strides = array<i32>} : memref<16x32xf32, #tpu.memory_space<vmem>>, vector<16x32xf32>,
    %c0_i32_14 = arith.constant 0 : i32
    %17 = arith.cmpi eq, %arg1, %c0_i32_14 : i32
    %18 = arith.extui %17 : i1 to i32
    %c0_i32_15 = arith.constant 0 : i32
    %19 = arith.cmpi ne, %18, %c0_i32_15 : i32
    scf.if %19 {
      %c0_16 = arith.constant 0 : index
      %c0_17 = arith.constant 0 : index
      %20 = vector.load %arg2[%c0_16, %c0_17] : memref<16x32xbf16, #tpu.memory_space<vmem>>, vector<16x32xbf16>
      %21 = arith.extf %20 : vector<16x32xbf16> to vector<16x32xf32>
      %c0_18 = arith.constant 0 : index
      %c0_19 = arith.constant 0 : index
      %22 = vector.load %arg10[%c0_18, %c0_19] : memref<16x32xf32, #tpu.memory_space<vmem>>, vector<16x32xf32>
      %23 = arith.addf %21, %22 : vector<16x32xf32>
      %c0_20 = arith.constant 0 : index
      %c0_21 = arith.constant 0 : index
      %24 = vector.load %arg6[%c0_20, %c0_21] : memref<1x32xf32, #tpu.memory_space<vmem>>, vector<1x32xf32>
      %25 = vector.broadcast %24 : vector<1x32xf32> to vector<16x32xf32>
      %26 = arith.addf %23, %25 : vector<16x32xf32>
      %cst_22 = arith.constant dense<0.000000e+00> : vector<16xf32>
      %27 = vector.multi_reduction <add>, %26, %cst_22 [1] : vector<16x32xf32> to vector<16xf32>
      %28 = vector.shape_cast %27 : vector<16xf32> to vector<16x1xf32>
      %cst_23 = arith.constant 3.200000e+01 : f32
      %29 = vector.broadcast %cst_23 : f32 to vector<16x1xf32>
      %30 = arith.divf %28, %29 : vector<16x1xf32>
      %31 = vector.broadcast %30 : vector<16x1xf32> to vector<16x32xf32>
      %32 = arith.subf %26, %31 : vector<16x32xf32>
      %33 = arith.mulf %32, %32 : vector<16x32xf32>
      %cst_24 = arith.constant dense<0.000000e+00> : vector<16xf32>
      %34 = vector.multi_reduction <add>, %33, %cst_24 [1] : vector<16x32xf32> to vector<16xf32>
      %35 = vector.shape_cast %34 : vector<16xf32> to vector<16x1xf32>
      %cst_25 = arith.constant 3.200000e+01 : f32
      %36 = vector.broadcast %cst_25 : f32 to vector<16x1xf32>
      %37 = arith.divf %35, %36 : vector<16x1xf32>
      %cst_26 = arith.constant 9.99999974E-6 : f32
      %38 = vector.broadcast %cst_26 : f32 to vector<16x1xf32>
      %39 = arith.addf %37, %38 : vector<16x1xf32>
      %40 = math.rsqrt %39 : vector<16x1xf32>
      %41 = vector.broadcast %40 : vector<16x1xf32> to vector<16x32xf32>
      %42 = arith.mulf %32, %41 : vector<16x32xf32>
      %c0_27 = arith.constant 0 : index
      %c0_28 = arith.constant 0 : index
      %43 = vector.load %arg7[%c0_27, %c0_28] : memref<1x32xf32, #tpu.memory_space<vmem>>, vector<1x32xf32>
      %44 = vector.broadcast %43 : vector<1x32xf32> to vector<16x32xf32>
      %45 = arith.mulf %42, %44 : vector<16x32xf32>
      %c0_29 = arith.constant 0 : index
      %c0_30 = arith.constant 0 : index
      %46 = vector.load %arg8[%c0_29, %c0_30] : memref<1x32xf32, #tpu.memory_space<vmem>>, vector<1x32xf32>
      %47 = vector.broadcast %46 : vector<1x32xf32> to vector<16x32xf32>
      %48 = arith.addf %45, %47 : vector<16x32xf32>
      %c0_31 = arith.constant 0 : index
      %c0_32 = arith.constant 0 : index
      %49 = vector.load %arg9[%c0_31, %c0_32] : memref<16x32xf32, #tpu.memory_space<vmem>>, vector<16x32xf32>
      tpu.vector_store %arg9[%c0_31, %c0_32], %48 {strides = array<i32>} : memref<16x32xf32, #tpu.memory_space<vmem>>, vector<16x32xf32>,
    } else {
    }
    return
  }
  func.func @transform_0(%arg0: i32, %arg1: i32) -> (i32, i32) {
    %c0_i32 = arith.constant 0 : i32
    %c0_i32_0 = arith.constant 0 : i32
    return %arg0, %c0_i32 : i32, i32
  }
  func.func @transform_1(%arg0: i32, %arg1: i32) -> (i32, i32) {
    %c0_i32 = arith.constant 0 : i32
    %c0_i32_0 = arith.constant 0 : i32
    return %c0_i32, %arg1 : i32, i32
  }
  func.func @transform_2(%arg0: i32, %arg1: i32) -> (i32, i32) {
    %c0_i32 = arith.constant 0 : i32
    %c0_i32_0 = arith.constant 0 : i32
    return %c0_i32, %arg1 : i32, i32
  }
  func.func @transform_3(%arg0: i32, %arg1: i32) -> (i32, i32) {
    %c0_i32 = arith.constant 0 : i32
    %c0_i32_0 = arith.constant 0 : i32
    return %arg1, %c0_i32 : i32, i32
  }
  func.func @transform_4(%arg0: i32, %arg1: i32) -> (i32, i32) {
    %c0_i32 = arith.constant 0 : i32
    %c0_i32_0 = arith.constant 0 : i32
    %c0_i32_1 = arith.constant 0 : i32
    return %c0_i32, %c0_i32_0 : i32, i32
  }
  func.func @transform_5(%arg0: i32, %arg1: i32) -> (i32, i32) {
    %c0_i32 = arith.constant 0 : i32
    %c0_i32_0 = arith.constant 0 : i32
    %c0_i32_1 = arith.constant 0 : i32
    return %c0_i32, %c0_i32_0 : i32, i32
  }
  func.func @transform_6(%arg0: i32, %arg1: i32) -> (i32, i32) {
    %c0_i32 = arith.constant 0 : i32
    %c0_i32_0 = arith.constant 0 : i32
    %c0_i32_1 = arith.constant 0 : i32
    return %c0_i32, %c0_i32_0 : i32, i32
  }
  func.func @transform_7(%arg0: i32, %arg1: i32) -> (i32, i32) {
    %c0_i32 = arith.constant 0 : i32
    %c0_i32_0 = arith.constant 0 : i32
    return %arg0, %c0_i32 : i32, i32
  }
}

</mosaic_0001>

<bundles_post_ra>
// kernel: transformer_encoder_layer_forward.3
= control target key start
LH: loop header
LB: loop body
LE: loop exit
PB: predicated region body
PF: predicated region fallthrough
CT: control target
= control target key end

     0   :  { %vm31_vm0 = vcmask 261120   ;;  %v324_v0 = vmov 0.0   ;;  %vm325_vm1 = vmmov 0   ;;  %vm146_vm2 = vcmask 523264   ;;  %s419_s1 = inlined_call_operand.vmem [shape: bf16[32,64], index: 1, kind: input, shape index: {}]   ;;  %s420_s3 = inlined_call_operand.vmem [shape: bf16[64,32], index: 3, kind: input, shape index: {}]   ;;  %s421_s0 = inlined_call_operand.vmem [shape: bf16[16,32], index: 0, kind: input, shape index: {}]   ;;  %s422_s2 = inlined_call_operand.vmem [shape: f32[1,64], index: 2, kind: input, shape index: {}]   ;;  %s423_s4 = inlined_call_operand.vmem [shape: f32[1,32], index: 4, kind: input, shape index: {}]   ;;  %s424_s5 = inlined_call_operand.vmem [shape: f32[1,32], index: 5, kind: input, shape index: {}]   ;;  %s425_s6 = inlined_call_operand.vmem [shape: f32[1,32], index: 6, kind: input, shape index: {}]   ;;  %s426_s7 = inlined_call_operand.vmem [shape: f32[16,32], index: 7, kind: output, shape index: {}]  }
   0x1   :  { %291 = vmatprep.subr.bf16.mxu0 %v324_v0  ;;  %v313_v1 = vld [vmem:[%s419_s1] sm:$0xff]   ;;  %295 = vmatprep.mubr.msk.bf16.mxu0 %vm325_vm1, %v324_v0  ;;  %32 = vst.msk [vmem:[#allocation2] sm:$0xff] %vm31_vm0, %v324_v0  ;;  %33 = vst.msk [vmem:[#allocation2 + $0x8] sm:$0xff] %vm31_vm0, %v324_v0  ;;  %v314_v2 = vld [vmem:[%s419_s1 + $0x8] sm:$0xff]  }
   0x2   :  { %299 = vmatprep.subr.bf16.mxu1 %v324_v0  ;;  %307 = vmatprep.mubr.msk.bf16.mxu1 %vm325_vm1, %v324_v0  ;;  %v316_v3 = vld [vmem:[%s420_s3] sm:$0xff]   ;;  %v317_v5 = vld [vmem:[%s420_s3 + $0x8] sm:$0xff]   ;;  %v318_v6 = vld [vmem:[%s420_s3 + $0x10] sm:$0xff]  }
   0x3   :  { %292 = vmatpush3.bf16.msra.mxu0 %v313_v1  ;;  %v315_v4 = vld [vmem:[%s421_s0] sm:$0xff]   ;;  %300 = vmatpush3.bf16.msra.mxu1 %v316_v3  ;;  %v319_v7 = vld [vmem:[%s420_s3 + $0x18] sm:$0xff]  }
   0x4   :  { %293 = vmatprep.subr.bf16.mxu0 %v324_v0  ;;  %301 = vmatprep.subr.bf16.mxu1 %v324_v0  ;;  %v266_v8 = vld [vmem:[%s422_s2] ss:$0 sm:$0xff] }
   0x5   :  { %v280_v26 = vld [vmem:[%s421_s0] sm:$0xff]  }
   0x6   :  { %v281_v27 = vunpack.c.l.bf16 %v280_v26  ;;  %v282_v28 = vunpack.c.h.bf16 %v280_v26  ;;  %v276_v30 = vld [vmem:[%s423_s4] ss:$0 sm:$0xff] }
   0x7   :  { %294 = vmatpush3.bf16.msra.mxu0 %v314_v2  ;;  %302 = vmatpush3.bf16.msra.mxu1 %v317_v5  ;;  %v277_v55 = vld [vmem:[%s424_s5] ss:$0 sm:$0xff] }
   0x8   :  { %303 = vmatprep.subr.bf16.mxu1 %v324_v0  ;;  %v111_v18 = vld [vmem:[#allocation2] sm:$0xff]  ;;  %v112_v20 = vld [vmem:[#allocation2 + $0x8] sm:$0xff] }
   0x9   :  { %v278_v57 = vld [vmem:[%s425_s6] ss:$0 sm:$0xff] }
   0xa   :  { %296 = vmatmul.mubr.msk.bf16.vlgmr.msra.gmra.mrb[0].mxu0 %vm31_vm0, %v315_v4 }
   0xb   :  { %304 = vmatpush3.bf16.msra.mxu1 %v318_v6 }
   0xc   :  { %305 = vmatprep.subr.bf16.mxu1 %v324_v0 }
   0xf   :  { %306 = vmatpush3.bf16.msra.mxu1 %v319_v7 }
  0xdd   :  { %v102_v9 = vpop.f32.mrb[0].mxu0 }
  0xde   :  { %v103_v10 = vadd.f32 %v266_v8, %v102_v9  ;;  %v297_v11 = vpop.f32.mrb[1].mxu0 }
  0xdf   :  { %v105_v12 = vpop.f32.mrb[2].mxu0 }
  0xe0   :  { %v106_v13 = vadd.f32 %v266_v8, %v105_v12  ;;  %v298_v14 = vpop.f32.mrb[3].mxu0  ;;  %v109_v15 = vmax.f32 %v103_v10, 0.0 }
  0xe2   :  { %v110_v16 = vmax.f32 %v106_v13, 0.0 }
  0xe4   :  { %v113_v17 = vpack.c.bf16 %v110_v16, %v109_v15 }
  0xe6   :  { %308 = vmatmul.mubr.msk.bf16.vlgmr.msra.gmra.mrb[0].mxu1 %vm146_vm2, %v113_v17 }
 0x1b9   :  { %v184_v19 = vpop.f32.mrb[0].mxu1 }
 0x1ba   :  { %v191_v21 = vadd.f32 %v184_v19, %v111_v18  ;;  %v309_v22 = vpop.f32.mrb[1].mxu1 }
 0x1bb   :  { %v187_v23 = vpop.f32.mrb[2].mxu1 }
 0x1bc   :  { %193 = vst.msk [vmem:[#allocation2] sm:$0xff] %vm31_vm0, %v191_v21  ;;  %v192_v24 = vadd.f32 %v187_v23, %v112_v20  ;;  %v310_v25 = vpop.f32.mrb[3].mxu1 }
 0x1be   :  { %194 = vst.msk [vmem:[#allocation2 + $0x8] sm:$0xff] %vm31_vm0, %v192_v24 }
 0x1c3   :  { %v202_v29 = vld [vmem:[#allocation2] sm:$0xff] }
 0x1c4   :  { %v204_v31 = vadd.f32 %v281_v27, %v202_v29 }
 0x1c5   :  { %v203_v32 = vld [vmem:[#allocation2 + $0x8] sm:$0xff] }
 0x1c6   :  { %v213_v33 = vadd.f32 %v276_v30, %v204_v31  ;;  %v205_v34 = vadd.f32 %v282_v28, %v203_v32 }
 0x1c8   :  { %v215_v35 = vsel %vm31_vm0, %v213_v33, 0.0  ;;  %v214_v36 = vadd.f32 %v276_v30, %v205_v34 }
 0x1c9   :  { %216 = vadd.xlane.f32.xlu0 %v215_v35 }
 0x1ca   :  { %v218_v37 = vsel %vm31_vm0, %v214_v36, 0.0 }
 0x1cd   :  { %219 = vadd.xlane.f32.xlu0 %v218_v37 }
 0x256   :  { %v217_v38 = vpop.xlane.xlu0 %216 }
 0x257   :  { %v222_v39 = vmul.f32 0.03125, %v217_v38 }
 0x259   :  { %v224_v40 = vsub.f32 %v213_v33, %v222_v39 }
 0x25a   :  { %v220_v41 = vpop.xlane.xlu0 %219 }
 0x25b   :  { %v223_v42 = vmul.f32 0.03125, %v220_v41  ;;  %v226_v43 = vmul.f32 %v224_v40, %v224_v40 }
 0x25d   :  { %v225_v44 = vsub.f32 %v214_v36, %v223_v42  ;;  %v228_v45 = vsel %vm31_vm0, %v226_v43, 0.0 }
 0x25e   :  { %229 = vadd.xlane.f32.xlu1 %v228_v45 }
 0x25f   :  { %v227_v46 = vmul.f32 %v225_v44, %v225_v44 }
 0x261   :  { %v231_v47 = vsel %vm31_vm0, %v227_v46, 0.0 }
 0x262   :  { %232 = vadd.xlane.f32.xlu1 %v231_v47 }
 0x2eb   :  { %v230_v48 = vpop.xlane.xlu1 %229 }
 0x2ec   :  { %v234_v49 = vmul.f32 0.03125, %v230_v48 }
 0x2ee   :  { %v236_v50 = vadd.f32 1e-05, %v234_v49 }
 0x2ef   :  { %v233_v51 = vpop.xlane.xlu1 %232 }
 0x2f0   :  { %320 = vrsqrt.f32 %v236_v50  ;;  %v235_v52 = vmul.f32 0.03125, %v233_v51 }
 0x2f2   :  { %v237_v53 = vadd.f32 1e-05, %v235_v52 }
 0x2f4   :  { %322 = vrsqrt.f32 %v237_v53 }
 0x2fa   :  { %v321_v54 = vpop.eup %320 }
 0x2fb   :  { %v240_v56 = vmul.f32 %v321_v54, %v224_v40 }
 0x2fd   :  { %v249_v58 = vmul.f32 %v277_v55, %v240_v56 }
 0x2fe   :  { %v323_v59 = vpop.eup %322 }
 0x2ff   :  { %v258_v60 = vadd.f32 %v278_v57, %v249_v58  ;;  %v241_v61 = vmul.f32 %v323_v59, %v225_v44 }
 0x301   :  { %260 = vst.msk [vmem:[%s426_s7] sm:$0xff] %vm31_vm0, %v258_v60  ;;  %v250_v62 = vmul.f32 %v277_v55, %v241_v61 }
 0x303   :  { %v259_v63 = vadd.f32 %v278_v57, %v250_v62 }
 0x305   :  { %261 = vst.msk [vmem:[%s426_s7 + $0x8] sm:$0xff] %vm31_vm0, %v259_v63 }

// kernel: transformer_encoder_layer_forward.2
= control target key start
LH: loop header
LB: loop body
LE: loop exit
PB: predicated region body
PF: predicated region fallthrough
CT: control target
= control target key end

     0   :  { %15 = vsyncpa [#allocation7], 0  ;;  %s2304_s13 = smov 0   ;;  %s2306_s14 = smov 0   ;;  %s2675_s0 = inlined_call_operand.vmem [shape: f32[2,8,32], index: 0, kind: input, shape index: {}, may-alias: {0,1}]   ;;  %s2676_s1 = inlined_call_operand.vmem [shape: f32[2,8,32], index: 1, kind: input, shape index: {}, may-alias: {0,1}]   ;;  %s2677_s2 = inlined_call_operand.vmem [shape: bf16[32,32], index: 2, kind: input, shape index: {}]   ;;  %s2678_s3 = inlined_call_operand.vmem [shape: f32[1,32], index: 3, kind: input, shape index: {}]   ;;  %s2679_s4 = inlined_call_operand.vmem [shape: bf16[32,64], index: 4, kind: input, shape index: {}]   ;;  %s2680_s5 = inlined_call_operand.vmem [shape: f32[1,64], index: 5, kind: input, shape index: {}]   ;;  %s2681_s6 = inlined_call_operand.vmem [shape: bf16[32,32], index: 6, kind: input, shape index: {}]   ;;  %s2682_s7 = inlined_call_operand.vmem [shape: f32[1,32], index: 7, kind: input, shape index: {}]   ;;  %s2683_s8 = inlined_call_operand.vmem [shape: f32[1,32], index: 8, kind: input, shape index: {}]   ;;  %s2684_s9 = inlined_call_operand.hbm [shape: f32[1,32], index: 9, kind: input, shape index: {}]   ;;  %s2685_s10 = inlined_call_operand.vmem [shape: bf16[2,8,32], index: 10, kind: output, shape index: {}]  }
   0x1   :  { %s2308_s15 = smov 0  }
   0x2 LB: > { %s1958_s16 = sadd.s32 4294967295, %s2233_s15   ;;  %s40_s17 = sadd.s32 1, %s2229_s14  ;;  %s2233_s15 = sphi %s2308_s15, %s21_s15   ;;  %s2229_s14 = sphi %s2306_s14, %s2695_s14   ;;  %s2225_s13 = sphi %s2304_s13, %s2694_s13  }
   0x3   : > { %p42_p0 = scmp.ge.s32.totalorder %s40_s17, 2  ;;  %p1960_p1 = scmp.ge.s32.totalorder %s2233_s15, 1 }
   0x4   : > { %p297_p2 = scmp.lt.s32.totalorder %s2233_s15, 3  ;;  %p2329_p4 = scmp.eq.s32.totalorder %s1958_s16, 0 }
   0x5   : > { %s2697_s17 = smov (%p42_p0, %s40_s17), 0  ;;  %s2235_s20 = smov [#allocation6]  }
   0x6   : > { %p2325_p3 = pnand %p1960_p1, %p297_p2  ;;  %s331_s21 = sshll.u32 %s2235_s20, 4  ;;  %s332_s21 = int_to_ptr.vmem [resolvable:$true] %s331_s21 }
   0x7   : > { %s2690_s19 = scalar_select %p2329_p4, 1, 0 }
   0x8   : > { %s2689_s18 = scalar_select %p2325_p3, 1, 0 }
   0x9   : > { %p2101_p5 = pneg %p2325_p3  ;;  %s2179_s25 = scalar_lea.hbm %s2684_s9, 16 }
   0xa   : > { %p2180_p7 = scmp.ne.s32.totalorder %s2684_s9, %s2179_s25  ;;  %p2186_p11 = scmp.lt.u32.totalorder %s2179_s25, %s2684_s9 }
   0xb   : > { %p2337_p6 = pnand %p2329_p4, %p2101_p5 }
   0xd   : > { %p2181_p8 = pneg %p2337_p6 }
   0xf   : > { %p2182_p9 = pnand %p2181_p8, %p2180_p7 }
  0x11   : > { %p2183_p10 = pneg %p2182_p9 }
  0x13   : > { %p2188_p12 = pnand %p2186_p11, %p2183_p10 }
  0x15   : > { %2191 = shalt.err (!%p2188_p12)
}
  0x16   : > { %s2192_s30 = scalar_lea.vmem %s332_s21, 16  ;;  %s2199_s11 = scalar_lea.vmem %s332_s21, 32 }
  0x17   : > { %p2193_p13 = scmp.ne.s32.totalorder %s332_s21, %s2192_s30  ;;  %p2200_p2 = scmp.lt.s32.totalorder %s332_s21, %s332_s21 }
  0x18   : > { %p2201_p5 = scmp.lt.s32.totalorder %s2199_s11, %s2192_s30 }
  0x19   : > { %p2195_p0 = pnand %p2193_p13, %p2181_p8 }
  0x1a   : > { %p2202_p4 = por %p2201_p5, %p2200_p2 }
  0x1b   : > { %p2196_p1 = pneg %p2195_p0 }
  0x1d   : > { %p2203_p3 = pnand %p2202_p4, %p2196_p1 }
  0x1f   : > { %2206 = shalt.err (!%p2203_p3)
}
  0x20   : > { %2104 = dma.hbm_to_vmem [thread:$0]  (!%p2337_p6), %s2684_s9, 16, %s332_s21, [#allocation7]  }
  0x21   : > { %p2692_p7 = scmp.ne.s32.totalorder %s2689_s18, 0 }
  0x22   : > { %p2693_p9 = scmp.ne.s32.totalorder (!%p2692_p7), %s2690_s19, 0 }
  0x23   : > { %364 = sbr.rel (%p2692_p7) target bundleno = 1897 (0x769), region = 60 }
  0x2a   : > { %2220 = dma.done.wait (%p2693_p9), [#allocation7], 16  }
  0x2b   : > { %2222 = vsyncadd (%p2693_p9), [#allocation7], 4294967280  ;;  %p413_p8 = scmp.lt.s32.totalorder %s2225_s13, 1  ;;  %v2236_v0 = vmov 0.0   ;;  %vm2237_vm0 = vmmov 0   ;;  %v2147_v1 = vld [vmem:[%s2677_s2] sm:$0xff]   ;;  %v523_v23 = vlaneseq }
  0x2c   : > { %2025 = vmatprep.subr.bf16.mxu0 %v2236_v0  ;;  %2033 = vmatprep.subr.bf16.mxu1 %v2236_v0  ;;  %v2148_v2 = vld [vmem:[%s2679_s4] sm:$0xff]   ;;  %v2149_v3 = vld [vmem:[%s2677_s2 + $0x8] sm:$0xff]   ;;  %vm464_vm1 = vcmask 261120   ;;  %s2238_s21 = smov 104   ;;  %s2239_s22 = smov 120   ;;  %vm672_vm2 = vcmask 64512  }
  0x2d   : > { %2029 = vmatprep.mubr.msk.bf16.mxu0 %vm2237_vm0, %v2236_v0  ;;  %s2699_s13 = smov (!%p413_p8, %s2225_s13), 1  ;;  %2037 = vmatprep.mubr.msk.bf16.mxu1 %vm2237_vm0, %v2236_v0  ;;  %v2150_v4 = vld [vmem:[%s2679_s4 + $0x8] sm:$0xff]   ;;  %v1968_v9 = vld [vmem:[%s2678_s3] ss:$0 sm:$0xff]  ;;  %s2240_s23 = smov 112   ;;  %673 = vst.msk [vmem:[#allocation5] sm:$0xff] %vm672_vm2, %v2236_v0 }
  0x2e   : > { %s1965_s18 = sshll.u32 %s2699_s13, 3  ;;  %2026 = vmatpush3.bf16.msra.mxu0 %v2147_v1  ;;  %2034 = vmatpush3.bf16.msra.mxu1 %v2148_v2  ;;  %v1974_v11 = vld [vmem:[%s2680_s5] ss:$0 sm:$0xff]  ;;  %674 = vst.msk [vmem:[#allocation5 + $0x8] sm:$0xff] %vm672_vm2, %v2236_v0  ;;  %675 = vst.msk [vmem:[#allocation5 + $0x10] sm:$0xff] %vm672_vm2, %v2236_v0  ;;  %v524_v27 = vshrl.u32 %v523_v23, 7 }
  0x2f   : > { %s419_s25 = scalar_lea.vmem %s2675_s0, %s1965_s18  ;;  %s426_s28 = scalar_lea.vmem %s2676_s1, %s1965_s18  ;;  %2027 = vmatprep.subr.bf16.mxu0 %v2236_v0  ;;  %2035 = vmatprep.subr.bf16.mxu1 %v2236_v0  ;;  %676 = vst.msk [vmem:[#allocation5 + $0x18] sm:$0xff] %vm672_vm2, %v2236_v0  ;;  %v2241_v21 = vmov 1983009808   ;;  %v2242_v24 = vmov 1934713408   ;;  %vm658_vm3 = vcmask 60416  }
  0x30   : > { %v2394_v5 = vld [vmem:[%s419_s25] sm:$0xff]  ;;  %v521_v22 = vunpack.c.l.s4 %v2241_v21  ;;  %v553_v25 = vunpack.c.l.s4 %v2242_v24  ;;  %vm663_vm4 = vcmask 7168   ;;  %s2245_s24 = smov 96   ;;  %vm1337_vm5 = vcmask 1043456   ;;  %s2246_s29 = smov 16  }
  0x31   : > { %v677_v6 = vld [vmem:[%s426_s28] sm:$0xff]  ;;  %v440_v7 = vpack.c.bf16 %v2394_v5, %v2394_v5  ;;  %668 = vst.msk [vmem:[#allocation4] sm:$0xff] %vm663_vm4, %v2236_v0  ;;  %669 = vst.msk [vmem:[#allocation4 + $0x8] sm:$0xff] %vm663_vm4, %v2236_v0  ;;  %s2247_s30 = smov 8   ;;  %s2248_s11 = smov 24   ;;  %vm1747_vm6 = vcmask 130048  }
  0x32   : > { %2028 = vmatpush3.bf16.msra.mxu0 %v2149_v3  ;;  %v678_v8 = vpack.c.bf16 %v677_v6, %v677_v6  ;;  %2036 = vmatpush3.bf16.msra.mxu1 %v2150_v4  ;;  %v522_v26 = vunpack.c.0.s8 %v521_v22  ;;  %v554_v30 = vunpack.c.0.s8 %v553_v25  ;;  %670 = vst.msk [vmem:[#allocation4 + $0x10] sm:$0xff] %vm663_vm4, %v2236_v0  ;;  %671 = vst.msk [vmem:[#allocation4 + $0x18] sm:$0xff] %vm663_vm4, %v2236_v0  ;;  %vm1749_vm7 = vcmask 195584   ;;  %s1967_s20 = sshll.u32 %s2699_s13, 2 }
  0x33   : > { %2041 = vmatprep.subr.bf16.mxu0 %v2236_v0  ;;  %2047 = vmatprep.subr.bf16.mxu1 %v2236_v0  ;;  %vm1851_vm8 = vcmask 257024  }
  0x34   : > { %v2425_v31 = vsub.s32 %v522_v26, %v524_v27  ;;  %v2429_v38 = vsub.s32 %v554_v30, %v524_v27 }
  0x35   : > { %2030 = vmatmul.mubr.msk.bf16.vlgmr.msra.gmra.mrb[0].mxu0 %vm464_vm1, %v440_v7  ;;  %2038 = vmatmul.mubr.msk.bf16.vlgmr.msra.gmra.mrb[0].mxu1 %vm464_vm1, %v678_v8 }
  0x36   : > { %2043 = vmatprep.mubr.msk.bf16.mxu0 %vm2237_vm0, %v2236_v0  ;;  %2049 = vmatprep.mubr.msk.bf16.mxu1 %vm2237_vm0, %v2236_v0 }
 0x108   : > { %v502_v10 = vpop.f32.mrb[0].mxu0  ;;  %v740_v14 = vpop.f32.mrb[0].mxu1 }
 0x109   : > { %v503_v12 = vadd.f32 %v1968_v9, %v502_v10  ;;  %v2031_v13 = vpop.f32.mrb[1].mxu0  ;;  %v2039_v16 = vpop.f32.mrb[1].mxu1  ;;  %v2412_v17 = vadd.f32 %v1974_v11, %v740_v14 }
 0x10a   : > { %v505_v15 = vpop.f32.mrb[2].mxu0  ;;  %v743_v18 = vpop.f32.mrb[2].mxu1 }
 0x10b   : > { %515 = vrot.lane.b32.xlu1 %v503_v12, %s2238_s21  ;;  %509 = vrot.lane.b32.xlu0 %v503_v12, %s2239_s22  ;;  %v2032_v19 = vpop.f32.mrb[3].mxu0  ;;  %v2040_v20 = vpop.f32.mrb[3].mxu1 }
 0x10f   : > { %747 = vrot.lane.b32.xlu1 %v2412_v17, %s2239_s22  ;;  %512 = vrot.lane.b32.xlu0 %v503_v12, %s2240_s23 }
 0x113   : > { %753 = vrot.lane.b32.xlu1 %v2412_v17, %s2238_s21  ;;  %750 = vrot.lane.b32.xlu0 %v2412_v17, %s2240_s23  ;;  %s433_s23 = scalar_lea.vmem %s2685_s10, %s1967_s20 }
 0x17d   : > { %v516_v28 = vpop.permute.xlu1 %515  ;;  %v510_v29 = vpop.permute.xlu0 %509 }
 0x17e   : > { %v534_v32 = vcombine.low %v510_v29, %v516_v28  ;;  %v535_v33 = vcombine.high %v510_v29, %v516_v28 }
 0x180   : > { %v542_v39 = vrot.slane %v534_v32, %v2425_v31  ;;  %v549_v40 = vrot.slane %v535_v33, %v2425_v31 }
 0x181   : > { %v2427_v34 = vpop.permute.xlu1 %747  ;;  %v513_v35 = vpop.permute.xlu0 %512 }
 0x182   : > { %v518_v36 = vcombine.low %v503_v12, %v513_v35  ;;  %v519_v37 = vcombine.high %v503_v12, %v513_v35 }
 0x184   : > { %v526_v41 = vrot.slane %v518_v36, %v2425_v31  ;;  %v533_v42 = vrot.slane %v519_v37, %v2425_v31 }
 0x185   : > { %v2435_v43 = vpop.permute.xlu1 %753  ;;  %v2437_v44 = vpop.permute.xlu0 %750 }
 0x186   : > { %v550_v45 = vcombine.low %v526_v41, %v542_v39  ;;  %v551_v46 = vcombine.high %v526_v41, %v542_v39  ;;  %v566_v47 = vcombine.low %v533_v42, %v549_v40  ;;  %v567_v48 = vcombine.high %v533_v42, %v549_v40 }
 0x187   : > { %v772_v49 = vcombine.low %v2427_v34, %v2435_v43  ;;  %v773_v50 = vcombine.high %v2427_v34, %v2435_v43  ;;  %v756_v51 = vcombine.low %v2412_v17, %v2437_v44  ;;  %v757_v52 = vcombine.high %v2412_v17, %v2437_v44 }
 0x188   : > { %v558_v53 = vrot.slane %v550_v45, %v2429_v38  ;;  %v565_v54 = vrot.slane %v551_v46, %v2429_v38  ;;  %v574_v55 = vrot.slane %v566_v47, %v2429_v38  ;;  %v581_v56 = vrot.slane %v567_v48, %v2429_v38 }
 0x189   : > { %v780_v57 = vrot.slane %v772_v49, %v2425_v31  ;;  %v787_v58 = vrot.slane %v773_v50, %v2425_v31  ;;  %v764_v59 = vrot.slane %v756_v51, %v2425_v31  ;;  %v771_v60 = vrot.slane %v757_v52, %v2425_v31 }
 0x18a   : > { %v586_v61 = vcombine.low %v558_v53, %v565_v54  ;;  %v1972_v62 = vcombine.high %v558_v53, %v565_v54  ;;  %v602_v63 = vcombine.low %v574_v55, %v581_v56  ;;  %v1973_v1 = vcombine.high %v574_v55, %v581_v56 }
 0x18b   : > { %v788_v2 = vcombine.low %v764_v59, %v780_v57  ;;  %v789_v3 = vcombine.high %v764_v59, %v780_v57  ;;  %v804_v4 = vcombine.low %v771_v60, %v787_v58  ;;  %v805_v6 = vcombine.high %v771_v60, %v787_v58 }
 0x18c   : > { %v593_v7 = vrot.slane %v586_v61, %v2425_v31  ;;  %v601_v8 = vrot.slane %v1972_v62, %v2425_v31  ;;  %v609_v9 = vrot.slane %v602_v63, %v2425_v31  ;;  %v617_v10 = vrot.slane %v1973_v1, %v2425_v31 }
 0x18d   : > { %v796_v11 = vrot.slane %v788_v2, %v2429_v38  ;;  %v803_v12 = vrot.slane %v789_v3, %v2429_v38  ;;  %v812_v13 = vrot.slane %v804_v4, %v2429_v38  ;;  %v819_v14 = vrot.slane %v805_v6, %v2429_v38 }
 0x18e   : > { %v618_v15 = vcombine.low %v593_v7, %v601_v8  ;;  %v619_v16 = vcombine.high %v593_v7, %v601_v8  ;;  %v634_v18 = vcombine.low %v609_v9, %v617_v10  ;;  %v635_v19 = vcombine.high %v609_v9, %v617_v10 }
 0x18f   : > { %v824_v20 = vcombine.low %v796_v11, %v803_v12  ;;  %v1978_v21 = vcombine.high %v796_v11, %v803_v12  ;;  %v840_v22 = vcombine.low %v812_v13, %v819_v14  ;;  %v1979_v23 = vcombine.high %v812_v13, %v819_v14 }
 0x190   : > { %v626_v24 = vrot.slane %v618_v15, %v2429_v38  ;;  %v633_v25 = vrot.slane %v619_v16, %v2429_v38  ;;  %v642_v26 = vrot.slane %v634_v18, %v2429_v38  ;;  %v649_v27 = vrot.slane %v635_v19, %v2429_v38 }
 0x191   : > { %v831_v28 = vrot.slane %v824_v20, %v2425_v31  ;;  %v839_v29 = vrot.slane %v1978_v21, %v2425_v31  ;;  %v847_v30 = vrot.slane %v840_v22, %v2425_v31  ;;  %v855_v32 = vrot.slane %v1979_v23, %v2425_v31 }
 0x192   : > { %v650_v33 = vcombine.low %v626_v24, %v642_v26  ;;  %v651_v35 = vcombine.high %v626_v24, %v642_v26  ;;  %v652_v36 = vcombine.low %v633_v25, %v649_v27  ;;  %v653_v37 = vcombine.high %v633_v25, %v649_v27 }
 0x193   : > { %v856_v39 = vcombine.low %v831_v28, %v839_v29  ;;  %v872_v40 = vcombine.low %v847_v30, %v855_v32  ;;  %v857_v41 = vcombine.high %v831_v28, %v839_v29  ;;  %v873_v42 = vcombine.high %v847_v30, %v855_v32 }
 0x194   : > { %v654_v45 = vpack.c.bf16 %v650_v33, %v650_v33  ;;  %v655_v46 = vpack.c.bf16 %v651_v35, %v651_v35  ;;  %v656_v47 = vpack.c.bf16 %v652_v36, %v652_v36  ;;  %v657_v48 = vpack.c.bf16 %v653_v37, %v653_v37 }
 0x195   : > { %v864_v49 = vrot.slane %v856_v39, %v2429_v38  ;;  %v880_v50 = vrot.slane %v872_v40, %v2429_v38  ;;  %v871_v53 = vrot.slane %v857_v41, %v2429_v38  ;;  %v887_v54 = vrot.slane %v873_v42, %v2429_v38 }
 0x196   : > { %659 = vst.msk [vmem:[#allocation2] sm:$0xf] %vm658_vm3, %v654_v45  ;;  %660 = vst.msk [vmem:[#allocation2 + $0x4] sm:$0xf] %vm658_vm3, %v655_v46  ;;  %v2243_v7 = vmov -inf   ;;  %v2244_v29 = vmov 0  }
 0x197   : > { %661 = vst.msk [vmem:[#allocation2 + $0x8] sm:$0xf] %vm658_vm3, %v656_v47  ;;  %662 = vst.msk [vmem:[#allocation2 + $0xc] sm:$0xf] %vm658_vm3, %v657_v48  ;;  %v888_v51 = vcombine.low %v864_v49, %v880_v50  ;;  %v889_v52 = vcombine.high %v864_v49, %v880_v50  ;;  %v890_v59 = vcombine.low %v871_v53, %v887_v54  ;;  %2146 = vset.pattern.permute.xlu1 %v2244_v29 }
 0x198   : > { %v891_v60 = vcombine.high %v871_v53, %v887_v54  ;;  %665 = vst.msk [vmem:[#allocation3 + $0x8] sm:$0xff] %vm663_vm4, %v2243_v7  ;;  %664 = vst.msk [vmem:[#allocation3] sm:$0xff] %vm663_vm4, %v2243_v7  ;;  %2145 = vset.pattern.permute.xlu0 %v2244_v29 }
 0x199   : > { %v892_v55 = vpack.c.bf16 %v888_v51, %v888_v51  ;;  %v893_v56 = vpack.c.bf16 %v889_v52, %v889_v52  ;;  %v894_v61 = vpack.c.bf16 %v890_v59, %v890_v59  ;;  %666 = vst.msk [vmem:[#allocation3 + $0x10] sm:$0xff] %vm663_vm4, %v2243_v7  ;;  %667 = vst.msk [vmem:[#allocation3 + $0x18] sm:$0xff] %vm663_vm4, %v2243_v7 }
 0x19a   : > { %v895_v62 = vpack.c.bf16 %v891_v60, %v891_v60 }
 0x19b   : > { %v1057_v57 = vsel %vm672_vm2, %v892_v55, 0  ;;  %v1103_v58 = vsel %vm672_vm2, %v893_v56, 0  ;;  %v1149_v2 = vsel %vm672_vm2, %v894_v61, 0 }
 0x19c   : > { %2042 = vmatpush3.bf16.xpose.msra.mxu0 %v1057_v57  ;;  %2048 = vmatpush3.bf16.xpose.msra.mxu1 %v1103_v58  ;;  %v1195_v3 = vsel %vm672_vm2, %v895_v62, 0 }
 0x19d   : > { %2053 = vmatprep.subr.bf16.mxu0 %v2236_v0  ;;  %2059 = vmatprep.subr.bf16.mxu1 %v2236_v0  ;;  %v1048_v63 = vld [vmem:[#allocation2] sm:$0xf]  ;;  %v1049_v1 = vld [vmem:[#allocation2 + $0x4] sm:$0xf] }
 0x19e   : > { %v1050_v4 = vld [vmem:[#allocation2 + $0x8] sm:$0xf]  ;;  %v1051_v6 = vld [vmem:[#allocation2 + $0xc] sm:$0xf] }
 0x19f   : > { %v2531_v30 = vld [vmem:[#allocation3 + $0x8] sm:$0xff]  ;;  %v2533_v32 = vld [vmem:[#allocation3] sm:$0xff] }
 0x1a0   : > { %v2556_v42 = vld [vmem:[#allocation3 + $0x18] sm:$0xff] }
 0x1a3   : > { %2044 = vmatmul.mubr.msk.bf16.vlgmr.msra.gmra.mrb[4].mxu0 %vm672_vm2, %v1048_v63  ;;  %2050 = vmatmul.mubr.msk.bf16.vlgmr.msra.gmra.mrb[4].mxu1 %vm672_vm2, %v1049_v1 }
 0x1a4   : > { %2054 = vmatpush3.bf16.xpose.msra.mxu0 %v1149_v2  ;;  %2060 = vmatpush3.bf16.xpose.msra.mxu1 %v1195_v3 }
 0x1a5   : > { %2055 = vmatprep.mubr.msk.bf16.mxu0 %vm2237_vm0, %v2236_v0  ;;  %2061 = vmatprep.mubr.msk.bf16.mxu1 %vm2237_vm0, %v2236_v0 }
 0x1a6   : > { %2065 = vmatprep.subr.bf16.mxu0 %v2236_v0  ;;  %2071 = vmatprep.subr.bf16.mxu1 %v2236_v0 }
 0x1ab   : > { %2056 = vmatmul.mubr.msk.bf16.vlgmr.msra.gmra.mrb[8].mxu0 %vm672_vm2, %v1050_v4  ;;  %2062 = vmatmul.mubr.msk.bf16.vlgmr.msra.gmra.mrb[8].mxu1 %vm672_vm2, %v1051_v6 }
 0x1ac   : > { %2067 = vmatprep.mubr.msk.bf16.mxu0 %vm2237_vm0, %v2236_v0  ;;  %2073 = vmatprep.mubr.msk.bf16.mxu1 %vm2237_vm0, %v2236_v0 }
 0x276   : > { %v2511_v8 = vpop.f32.mrb[4].mxu0  ;;  %v2513_v9 = vpop.f32.mrb[4].mxu1 }
 0x277   : > { %v2045_v10 = vpop.f32.mrb[5].mxu0  ;;  %v2051_v11 = vpop.f32.mrb[5].mxu1  ;;  %v1244_v12 = vsel %vm672_vm2, %v2513_v9, -inf  ;;  %v1241_v13 = vsel %vm672_vm2, %v2511_v8, -inf }
 0x278   : > { %1245 = vmax.xlane.f32.xlu1 %v1244_v12  ;;  %v1142_v14 = vpop.f32.mrb[6].mxu1  ;;  %1242 = vmax.xlane.f32.xlu0 %v1241_v13  ;;  %v1096_v15 = vpop.f32.mrb[6].mxu0 }
 0x279   : > { %v2046_v16 = vpop.f32.mrb[7].mxu0  ;;  %v2052_v18 = vpop.f32.mrb[7].mxu1 }
 0x27e   : > { %v2519_v19 = vpop.f32.mrb[8].mxu0  ;;  %v2521_v20 = vpop.f32.mrb[8].mxu1 }
 0x27f   : > { %v2057_v21 = vpop.f32.mrb[9].mxu0  ;;  %v2063_v22 = vpop.f32.mrb[9].mxu1  ;;  %v1247_v23 = vsel %vm672_vm2, %v2519_v19, -inf  ;;  %v1250_v28 = vsel %vm672_vm2, %v2521_v20, -inf }
 0x280   : > { %v1234_v24 = vpop.f32.mrb[10].mxu1  ;;  %1248 = vmax.xlane.f32.xlu0 %v1247_v23  ;;  %v1188_v25 = vpop.f32.mrb[10].mxu0 }
 0x281   : > { %v2058_v26 = vpop.f32.mrb[11].mxu0  ;;  %v2064_v27 = vpop.f32.mrb[11].mxu1 }
 0x284   : > { %1251 = vmax.xlane.f32.xlu0 %v1250_v28 }
 0x289   : > { %896 = vrot.lane.b32.xlu1 %v2412_v17, %s2245_s24 }
 0x28d   : > { %900 = vrot.lane.b32.xlu1 %v2437_v44, %s2245_s24  ;;  %v2551_v44 = vld [vmem:[#allocation3 + $0x10] sm:$0xff] }
 0x291   : > { %902 = vrot.lane.b32.xlu1 %v2435_v43, %s2245_s24 }
 0x29a   : > { %898 = vrot.lane.b32.xlu0 %v2427_v34, %s2245_s24 }
 0x305   : > { %v1246_v33 = vpop.xlane.xlu1 %1245  ;;  %v1243_v35 = vpop.xlane.xlu0 %1242 }
 0x306   : > { %v2536_v36 = vmax.f32 %v2531_v30, %v1246_v33  ;;  %v2539_v37 = vmax.f32 %v2533_v32, %v1243_v35 }
 0x308   : > { %v1258_v17 = vsub.f32 %v2531_v30, %v2536_v36  ;;  %1556 = vst.msk [vmem:[#allocation3 + $0x8] sm:$0xff] %vm663_vm4, %v2536_v36  ;;  %v1257_v34 = vsub.f32 %v2533_v32, %v2539_v37  ;;  %1555 = vst.msk [vmem:[#allocation3] sm:$0xff] %vm663_vm4, %v2539_v37  ;;  %1276 = vperm.xlu1 %2146, %v2536_v36   ;;  %1271 = vperm.xlu0 %2145, %v2539_v37   ;;  %v1302_v32 = vld [vmem:[#allocation4 + $0x8] sm:$0xff]  ;;  %v1301_v37 = vld [vmem:[#allocation4] sm:$0xff] }
 0x309   : > { %v897_v43 = vpop.permute.xlu1 %896 }
 0x30d   : > { %v1249_v39 = vpop.xlane.xlu0 %1248  ;;  %v901_v41 = vpop.permute.xlu1 %900 }
 0x30e   : > { %v2554_v40 = vmax.f32 %v2551_v44, %v1249_v39  ;;  %v908_v48 = vcombine.low %v897_v43, %v901_v41  ;;  %v909_v49 = vcombine.high %v897_v43, %v901_v41 }
 0x310   : > { %v1259_v45 = vsub.f32 %v2551_v44, %v2554_v40  ;;  %1557 = vst.msk [vmem:[#allocation3 + $0x10] sm:$0xff] %vm663_vm4, %v2554_v40  ;;  %1281 = vperm.xlu1 %2146, %v2554_v40   ;;  %v916_v55 = vrot.slane %v908_v48, %v2425_v31  ;;  %v923_v56 = vrot.slane %v909_v49, %v2425_v31 }
 0x311   : > { %v1252_v46 = vpop.xlane.xlu0 %1251  ;;  %v903_v51 = vpop.permute.xlu1 %902 }
 0x312   : > { %v2564_v47 = vmax.f32 %v2556_v42, %v1252_v46 }
 0x314   : > { %v1260_v50 = vsub.f32 %v2556_v42, %v2564_v47  ;;  %1558 = vst.msk [vmem:[#allocation3 + $0x18] sm:$0xff] %vm663_vm4, %v2564_v47  ;;  %1286 = vperm.xlu0 %2145, %v2564_v47   ;;  %v1303_v42 = vld [vmem:[#allocation4 + $0x10] sm:$0xff] }
 0x315   : > { %v899_v52 = vpop.permute.xlu0 %898 }
 0x316   : > { %v924_v53 = vcombine.low %v899_v52, %v903_v51  ;;  %v925_v54 = vcombine.high %v899_v52, %v903_v51 }
 0x318   : > { %v932_v57 = vrot.slane %v924_v53, %v2425_v31  ;;  %v939_v58 = vrot.slane %v925_v54, %v2425_v31 }
 0x31a   : > { %v940_v59 = vcombine.low %v916_v55, %v932_v57  ;;  %v941_v60 = vcombine.high %v916_v55, %v932_v57  ;;  %v956_v61 = vcombine.low %v923_v56, %v939_v58  ;;  %v957_v62 = vcombine.high %v923_v56, %v939_v58 }
 0x31c   : > { %v948_v63 = vrot.slane %v940_v59, %v2429_v38  ;;  %v955_v1 = vrot.slane %v941_v60, %v2429_v38  ;;  %v964_v2 = vrot.slane %v956_v61, %v2429_v38  ;;  %v971_v3 = vrot.slane %v957_v62, %v2429_v38 }
 0x31e   : > { %v976_v4 = vcombine.low %v948_v63, %v955_v1  ;;  %v1980_v6 = vcombine.high %v948_v63, %v955_v1  ;;  %v992_v7 = vcombine.low %v964_v2, %v971_v3  ;;  %v1981_v10 = vcombine.high %v964_v2, %v971_v3 }
 0x320   : > { %v983_v11 = vrot.slane %v976_v4, %v2425_v31  ;;  %v991_v12 = vrot.slane %v1980_v6, %v2425_v31  ;;  %v999_v13 = vrot.slane %v992_v7, %v2425_v31  ;;  %v1007_v14 = vrot.slane %v1981_v10, %v2425_v31 }
 0x322   : > { %v1008_v15 = vcombine.low %v983_v11, %v991_v12  ;;  %v1024_v16 = vcombine.low %v999_v13, %v1007_v14  ;;  %v1009_v18 = vcombine.high %v983_v11, %v991_v12  ;;  %v1025_v21 = vcombine.high %v999_v13, %v1007_v14 }
 0x323   : > { %v1263_v11 = vmul.f32 1.442695, %v1258_v17  ;;  %v1261_v12 = vmul.f32 1.442695, %v1257_v34  ;;  %v1265_v13 = vmul.f32 1.442695, %v1259_v45 }
 0x324   : > { %v1016_v22 = vrot.slane %v1008_v15, %v2429_v38  ;;  %v1032_v23 = vrot.slane %v1024_v16, %v2429_v38  ;;  %v1023_v24 = vrot.slane %v1009_v18, %v2429_v38  ;;  %v1039_v25 = vrot.slane %v1025_v21, %v2429_v38  ;;  %v1304_v21 = vld [vmem:[#allocation4 + $0x18] sm:$0xff] }
 0x325   : > { %v1267_v14 = vmul.f32 1.442695, %v1260_v50 }
 0x326   : > { %v1040_v26 = vcombine.low %v1016_v22, %v1032_v23  ;;  %v1041_v27 = vcombine.high %v1016_v22, %v1032_v23  ;;  %v1042_v28 = vcombine.low %v1023_v24, %v1039_v25  ;;  %v1043_v29 = vcombine.high %v1023_v24, %v1039_v25 }
 0x328   : > { %v1044_v33 = vpack.c.bf16 %v1040_v26, %v1040_v26  ;;  %v1045_v35 = vpack.c.bf16 %v1041_v27, %v1041_v27  ;;  %v1046_v43 = vpack.c.bf16 %v1042_v28, %v1042_v28  ;;  %v1047_v39 = vpack.c.bf16 %v1043_v29, %v1043_v29 }
 0x32a   : > { %v1339_v41 = vsel %vm1337_vm5, %v1044_v33, 0  ;;  %v1385_v46 = vsel %vm1337_vm5, %v1045_v35, 0  ;;  %v1431_v48 = vsel %vm1337_vm5, %v1046_v43, 0  ;;  %v1477_v49 = vsel %vm1337_vm5, %v1047_v39, 0 }
 0x32b   : > { %2066 = vmatpush3.bf16.msra.mxu0 %v1339_v41  ;;  %2072 = vmatpush3.bf16.msra.mxu1 %v1385_v46  ;;  %v1520_v41 = vld [vmem:[#allocation5 + $0x8] sm:$0xff] }
 0x32c   : > { %2077 = vmatprep.subr.bf16.mxu0 %v2236_v0  ;;  %2083 = vmatprep.subr.bf16.mxu1 %v2236_v0 }
 0x387   : > { %v1277_v51 = vpop.permute.xlu1 %1276  ;;  %v1272_v52 = vpop.permute.xlu0 %1271 }
 0x388   : > { %v1290_v53 = vsub.f32 %v2513_v9, %v1277_v51  ;;  %v1289_v54 = vsub.f32 %v2511_v8, %v1272_v52 }
 0x38a   : > { %v1295_v55 = vmul.f32 1.442695, %v1290_v53  ;;  %v1293_v56 = vmul.f32 1.442695, %v1289_v54 }
 0x38c   : > { %2153 = vpow2.f32 %v1295_v55 }
 0x38d   : > { %2155 = vpow2.f32 %v1293_v56 }
 0x38f   : > { %v1282_v57 = vpop.permute.xlu1 %1281 }
 0x390   : > { %v1291_v58 = vsub.f32 %v2519_v19, %v1282_v57 }
 0x392   : > { %v1297_v59 = vmul.f32 1.442695, %v1291_v58 }
 0x393   : > { %v1287_v60 = vpop.permute.xlu0 %1286 }
 0x394   : > { %2157 = vpow2.f32 %v1297_v59  ;;  %v1292_v61 = vsub.f32 %v2521_v20, %v1287_v60 }
 0x396   : > { %v2154_v62 = vpop.eup %2153  ;;  %v1299_v63 = vmul.f32 1.442695, %v1292_v61 }
 0x397   : > { %v2156_v1 = vpop.eup %2155  ;;  %v1312_v2 = vsel %vm672_vm2, %v2154_v62, 0.0  ;;  %v1331_v9 = vpack.c.bf16 %v2154_v62, %v2154_v62 }
 0x398   : > { %2159 = vpow2.f32 %v1299_v63  ;;  %1313 = vadd.xlane.f32.xlu0 %v1312_v2  ;;  %v1309_v8 = vsel %vm672_vm2, %v2156_v1, 0.0  ;;  %v1330_v3 = vpack.c.bf16 %v2156_v1, %v2156_v1  ;;  %v1521_v63 = vld [vmem:[#allocation5 + $0x10] sm:$0xff] }
 0x399   : > { %1310 = vadd.xlane.f32.xlu1 %v1309_v8  ;;  %2074 = vmatmul.mubr.msk.bf16.vlgmr.msra.gmra.mrb[12].mxu1 %vm672_vm2, %v1331_v9  ;;  %2161 = vpow2.f32 %v1263_v11  ;;  %v1522_v9 = vld [vmem:[#allocation5 + $0x18] sm:$0xff] }
 0x39a   : > { %2068 = vmatmul.mubr.msk.bf16.vlgmr.msra.gmra.mrb[12].mxu0 %vm672_vm2, %v1330_v3  ;;  %2084 = vmatpush3.bf16.msra.mxu1 %v1477_v49  ;;  %2163 = vpow2.f32 %v1261_v12 }
 0x39b   : > { %2078 = vmatpush3.bf16.msra.mxu0 %v1431_v48  ;;  %2079 = vmatprep.mubr.msk.bf16.mxu0 %vm2237_vm0, %v2236_v0  ;;  %2165 = vpow2.f32 %v1265_v13  ;;  %v1519_v48 = vld [vmem:[#allocation5] sm:$0xff] }
 0x39c   : > { %2085 = vmatprep.mubr.msk.bf16.mxu1 %vm2237_vm0, %v2236_v0  ;;  %2089 = vmatprep.subr.bf16.mxu0 %v2236_v0  ;;  %2167 = vpow2.f32 %v1267_v14 }
 0x39e   : > { %v2158_v19 = vpop.eup %2157 }
 0x39f   : > { %v1315_v20 = vsel %vm672_vm2, %v2158_v19, 0.0  ;;  %v1332_v4 = vpack.c.bf16 %v2158_v19, %v2158_v19 }
 0x3a0   : > { %1316 = vadd.xlane.f32.xlu0 %v1315_v20 }
 0x3a2   : > { %v2160_v6 = vpop.eup %2159  ;;  %2080 = vmatmul.mubr.msk.bf16.vlgmr.msra.gmra.mrb[16].mxu0 %vm672_vm2, %v1332_v4 }
 0x3a3   : > { %v1318_v7 = vsel %vm672_vm2, %v2160_v6, 0.0  ;;  %v1333_v10 = vpack.c.bf16 %v2160_v6, %v2160_v6  ;;  %2093 = vmatprep.mubr.msk.bf16.mxu0 %vm2237_vm0, %v2236_v0  ;;  %v2162_v15 = vpop.eup %2161 }
 0x3a4   : > { %1319 = vadd.xlane.f32.xlu1 %v1318_v7  ;;  %v2164_v16 = vpop.eup %2163  ;;  %v1306_v17 = vmul.f32 %v2162_v15, %v1302_v32 }
 0x3a5   : > { %2086 = vmatmul.mubr.msk.bf16.vlgmr.msra.gmra.mrb[16].mxu1 %vm672_vm2, %v1333_v10  ;;  %v2166_v30 = vpop.eup %2165  ;;  %v1305_v34 = vmul.f32 %v2164_v16, %v1301_v37 }
 0x3a6   : > { %v2168_v36 = vpop.eup %2167  ;;  %v1307_v47 = vmul.f32 %v2166_v30, %v1303_v42 }
 0x3a7   : > { %v1308_v24 = vmul.f32 %v2168_v36, %v1304_v21 }
 0x3b5   : > { %1530 = vperm.xlu1 %2146, %v2162_v15  }
 0x3b6   : > { %1525 = vperm.xlu0 %2145, %v2164_v16  }
 0x3b9   : > { %1535 = vperm.xlu1 %2146, %v2166_v30  }
 0x3ba   : > { %1540 = vperm.xlu0 %2145, %v2168_v36  }
 0x425   : > { %v1314_v44 = vpop.xlane.xlu0 %1313 }
 0x426   : > { %v1311_v40 = vpop.xlane.xlu1 %1310  ;;  %v1322_v45 = vadd.f32 %v1314_v44, %v1306_v17 }
 0x427   : > { %v1321_v18 = vadd.f32 %v1311_v40, %v1305_v34 }
 0x428   : > { %1327 = vst.msk [vmem:[#allocation4 + $0x8] sm:$0xff] %vm663_vm4, %v1322_v45 }
 0x429   : > { %1326 = vst.msk [vmem:[#allocation4] sm:$0xff] %vm663_vm4, %v1321_v18 }
 0x42d   : > { %v1317_v50 = vpop.xlane.xlu0 %1316 }
 0x42e   : > { %v1323_v22 = vadd.f32 %v1317_v50, %v1307_v47 }
 0x42f   : > { %v1567_v23 = vld [vmem:[#allocation4 + $0x8] sm:$0xff] }
 0x430   : > { %1328 = vst.msk [vmem:[#allocation4 + $0x10] sm:$0xff] %vm663_vm4, %v1323_v22  ;;  %v1566_v25 = vld [vmem:[#allocation4] sm:$0xff]  ;;  %2169 = vrcp.f32 %v1567_v23 }
 0x431   : > { %v1320_v26 = vpop.xlane.xlu1 %1319  ;;  %2171 = vrcp.f32 %v1566_v25 }
 0x432   : > { %v1324_v27 = vadd.f32 %v1320_v26, %v1308_v24 }
 0x434   : > { %1329 = vst.msk [vmem:[#allocation4 + $0x18] sm:$0xff] %vm663_vm4, %v1324_v27 }
 0x435   : > { %v1531_v46 = vpop.permute.xlu1 %1530  ;;  %v1526_v49 = vpop.permute.xlu0 %1525 }
 0x436   : > { %v1544_v51 = vmul.f32 %v1531_v46, %v1520_v41  ;;  %v1543_v52 = vmul.f32 %v1526_v49, %v1519_v48 }
 0x437   : > { %v1568_v28 = vld [vmem:[#allocation4 + $0x10] sm:$0xff] }
 0x438   : > { %2173 = vrcp.f32 %v1568_v28 }
 0x439   : > { %v1536_v1 = vpop.permute.xlu1 %1535  ;;  %v1541_v8 = vpop.permute.xlu0 %1540 }
 0x43a   : > { %v2170_v29 = vpop.eup %2169  ;;  %v1545_v2 = vmul.f32 %v1536_v1, %v1521_v63  ;;  %v1546_v4 = vmul.f32 %v1541_v8, %v1522_v9 }
 0x43b   : > { %v2172_v33 = vpop.eup %2171  ;;  %1581 = vperm.xlu0 %2145, %v2170_v29   ;;  %v1569_v35 = vld [vmem:[#allocation4 + $0x18] sm:$0xff] }
 0x43c   : > { %1576 = vperm.xlu1 %2146, %v2172_v33   ;;  %2175 = vrcp.f32 %v1569_v35  ;;  %v2151_v33 = vld [vmem:[%s2681_s6] sm:$0xff]  }
 0x43d   : > { %2090 = vmatpush3.bf16.msra.mxu0 %v2151_v33 }
 0x43e   : > { %2091 = vmatprep.subr.bf16.mxu0 %v2236_v0 }
 0x442   : > { %v2174_v43 = vpop.eup %2173 }
 0x443   : > { %1586 = vperm.xlu1 %2146, %v2174_v43  }
 0x446   : > { %v2176_v39 = vpop.eup %2175 }
 0x447   : > { %1591 = vperm.xlu0 %2145, %v2176_v39  }
 0x46c   : > { %v1421_v53 = vpop.f32.mrb[12].mxu1 }
 0x46d   : > { %v1375_v54 = vpop.f32.mrb[12].mxu0  ;;  %v1548_v55 = vadd.f32 %v1544_v51, %v1421_v53  ;;  %v2075_v56 = vpop.f32.mrb[13].mxu1 }
 0x46e   : > { %v1547_v57 = vadd.f32 %v1543_v52, %v1375_v54  ;;  %v2069_v58 = vpop.f32.mrb[13].mxu0  ;;  %v1424_v59 = vpop.f32.mrb[14].mxu1  ;;  %v2152_v52 = vld [vmem:[%s2681_s6 + $0x8] sm:$0xff]  }
 0x46f   : > { %1552 = vst.msk [vmem:[#allocation5 + $0x8] sm:$0xff] %vm672_vm2, %v1548_v55  ;;  %v1378_v60 = vpop.f32.mrb[14].mxu0  ;;  %v2076_v61 = vpop.f32.mrb[15].mxu1  ;;  %2092 = vmatpush3.bf16.msra.mxu0 %v2152_v52 }
 0x470   : > { %1551 = vst.msk [vmem:[#allocation5] sm:$0xff] %vm672_vm2, %v1547_v57  ;;  %v2070_v62 = vpop.f32.mrb[15].mxu0 }
 0x475   : > { %v1467_v3 = vpop.f32.mrb[16].mxu0 }
 0x476   : > { %v1549_v19 = vadd.f32 %v1545_v2, %v1467_v3  ;;  %v2081_v20 = vpop.f32.mrb[17].mxu0  ;;  %v1563_v34 = vld [vmem:[#allocation5 + $0x8] sm:$0xff] }
 0x477   : > { %v1470_v6 = vpop.f32.mrb[18].mxu0  ;;  %v1562_v37 = vld [vmem:[#allocation5] sm:$0xff] }
 0x478   : > { %1553 = vst.msk [vmem:[#allocation5 + $0x10] sm:$0xff] %vm672_vm2, %v1549_v19  ;;  %v2082_v7 = vpop.f32.mrb[19].mxu0  ;;  %v1513_v10 = vpop.f32.mrb[16].mxu1 }
 0x479   : > { %v1550_v11 = vadd.f32 %v1546_v4, %v1513_v10  ;;  %v2087_v12 = vpop.f32.mrb[17].mxu1  ;;  %v1992_v7 = vld [vmem:[%s2682_s7] ss:$0 sm:$0xff] }
 0x47a   : > { %v1516_v13 = vpop.f32.mrb[18].mxu1 }
 0x47b   : > { %1554 = vst.msk [vmem:[#allocation5 + $0x18] sm:$0xff] %vm672_vm2, %v1550_v11  ;;  %v2088_v14 = vpop.f32.mrb[19].mxu1 }
 0x47f   : > { %v1564_v36 = vld [vmem:[#allocation5 + $0x10] sm:$0xff] }
 0x482   : > { %v1565_v44 = vld [vmem:[#allocation5 + $0x18] sm:$0xff] }
 0x4ba   : > { %v1582_v16 = vpop.permute.xlu0 %1581 }
 0x4bb   : > { %v1577_v15 = vpop.permute.xlu1 %1576  ;;  %v1595_v45 = vmul.f32 %v1582_v16, %v1563_v34 }
 0x4bc   : > { %v1594_v17 = vmul.f32 %v1577_v15, %v1562_v37 }
 0x4c2   : > { %v1587_v30 = vpop.permute.xlu1 %1586 }
 0x4c3   : > { %v1596_v32 = vmul.f32 %v1587_v30, %v1564_v36 }
 0x4c5   : > { %v1598_v18 = vcombine.low %v1594_v17, %v1596_v32  ;;  %v1599_v42 = vcombine.high %v1594_v17, %v1596_v32 }
 0x4c6   : > { %v1592_v40 = vpop.permute.xlu0 %1591 }
 0x4c7   : > { %v1597_v47 = vmul.f32 %v1592_v40, %v1565_v44  ;;  %v1606_v22 = vrot.slane %v1598_v18, %v2425_v31  ;;  %v1613_v23 = vrot.slane %v1599_v42, %v2425_v31  ;;  %v1997_v42 = vld [vmem:[#allocation6] ss:$0 sm:$0xff] }
 0x4c9   : > { %v1614_v50 = vcombine.low %v1595_v45, %v1597_v47  ;;  %v1615_v21 = vcombine.high %v1595_v45, %v1597_v47 }
 0x4cb   : > { %v1622_v24 = vrot.slane %v1614_v50, %v2425_v31  ;;  %v1629_v25 = vrot.slane %v1615_v21, %v2425_v31 }
 0x4cd   : > { %v1630_v26 = vcombine.low %v1606_v22, %v1622_v24  ;;  %v1631_v27 = vcombine.high %v1606_v22, %v1622_v24  ;;  %v1646_v28 = vcombine.low %v1613_v23, %v1629_v25  ;;  %v1647_v29 = vcombine.high %v1613_v23, %v1629_v25 }
 0x4cf   : > { %v1638_v35 = vrot.slane %v1630_v26, %v2429_v38  ;;  %v1645_v43 = vrot.slane %v1631_v27, %v2429_v38  ;;  %v1654_v39 = vrot.slane %v1646_v28, %v2429_v38  ;;  %v1661_v41 = vrot.slane %v1647_v29, %v2429_v38 }
 0x4d1   : > { %v1666_v46 = vcombine.low %v1638_v35, %v1645_v43  ;;  %v1990_v48 = vcombine.high %v1638_v35, %v1645_v43  ;;  %v1682_v49 = vcombine.low %v1654_v39, %v1661_v41  ;;  %v1991_v51 = vcombine.high %v1654_v39, %v1661_v41 }
 0x4d3   : > { %v1673_v53 = vrot.slane %v1666_v46, %v2425_v31  ;;  %v1681_v54 = vrot.slane %v1990_v48, %v2425_v31  ;;  %v1689_v55 = vrot.slane %v1682_v49, %v2425_v31  ;;  %v1697_v56 = vrot.slane %v1991_v51, %v2425_v31 }
 0x4d5   : > { %v1699_v57 = vcombine.high %v1673_v53, %v1681_v54  ;;  %v1715_v58 = vcombine.high %v1689_v55, %v1697_v56  ;;  %v1698_v59 = vcombine.low %v1673_v53, %v1681_v54  ;;  %v1714_v60 = vcombine.low %v1689_v55, %v1697_v56 }
 0x4d7   : > { %v1713_v61 = vrot.slane %v1699_v57, %v2429_v38  ;;  %v1729_v0 = vrot.slane %v1715_v58, %v2429_v38  ;;  %v1706_v62 = vrot.slane %v1698_v59, %v2429_v38  ;;  %v1722_v63 = vrot.slane %v1714_v60, %v2429_v38 }
 0x4d9   : > { %v1732_v1 = vcombine.low %v1713_v61, %v1729_v0  ;;  %v1731_v2 = vcombine.high %v1706_v62, %v1722_v63  ;;  %v1730_v9 = vcombine.low %v1706_v62, %v1722_v63  ;;  %v1733_v31 = vcombine.high %v1713_v61, %v1729_v0 }
 0x4db   : > { %1739 = vrot.lane.b32.xlu0 %v1732_v1, %s2246_s29  ;;  %1735 = vrot.lane.b32.xlu1 %v1731_v2, %s2247_s30 }
 0x4df   : > { %1743 = vrot.lane.b32.xlu1 %v1733_v31, %s2248_s11 }
 0x54d   : > { %v1736_v8 = vpop.permute.xlu1 %1735  ;;  %v1740_v3 = vpop.permute.xlu0 %1739 }
 0x54e   : > { %v1746_v19 = vsel %vm672_vm2, %v1730_v9, %v1736_v8 }
 0x54f   : > { %v1748_v4 = vsel %vm1747_vm6, %v1746_v19, %v1740_v3 }
 0x551   : > { %v1744_v20 = vpop.permute.xlu1 %1743 }
 0x552   : > { %v1750_v6 = vsel %vm1749_vm7, %v1748_v4, %v1744_v20 }
 0x553   : > { %v1751_v38 = vpack.c.bf16 %v1750_v6, %v1750_v6 }
 0x555   : > { %2094 = vmatmul.mubr.msk.bf16.vlgmr.msra.gmra.mrb[20].mxu0 %vm464_vm1, %v1751_v38 }
 0x628   : > { %v1812_v10 = vpop.f32.mrb[20].mxu0 }
 0x629   : > { %v1813_v11 = vadd.f32 %v1992_v7, %v1812_v10  ;;  %v2095_v12 = vpop.f32.mrb[21].mxu0 }
 0x62a   : > { %v1815_v13 = vpop.f32.mrb[22].mxu0 }
 0x62b   : > { %v2096_v14 = vpop.f32.mrb[23].mxu0  ;;  %v1819_v15 = vadd.f32 %v1813_v11, %v2394_v5  ;;  %v1996_v5 = vld [vmem:[%s2683_s8] ss:$0 sm:$0xff] }
 0x62d   : > { %v1820_v16 = vsel %vm464_vm1, %v1819_v15, 0.0 }
 0x62e   : > { %1821 = vadd.xlane.f32.xlu0 %v1820_v16 }
 0x6bb   : > { %v1822_v30 = vpop.xlane.xlu0 %1821 }
 0x6bc   : > { %v1824_v36 = vmul.f32 0.03125, %v1822_v30 }
 0x6be   : > { %v1825_v32 = vsub.f32 %v1819_v15, %v1824_v36 }
 0x6c0   : > { %v1826_v37 = vmul.f32 %v1825_v32, %v1825_v32 }
 0x6c2   : > { %v1827_v17 = vsel %vm464_vm1, %v1826_v37, 0.0 }
 0x6c3   : > { %1828 = vadd.xlane.f32.xlu1 %v1827_v17 }
 0x750   : > { %v1829_v34 = vpop.xlane.xlu1 %1828 }
 0x751   : > { %v1830_v44 = vmul.f32 0.03125, %v1829_v34 }
 0x753   : > { %v1831_v40 = vadd.f32 1e-05, %v1830_v44 }
 0x755   : > { %2177 = vrsqrt.f32 %v1831_v40 }
 0x75f   : > { %v2178_v45 = vpop.eup %2177 }
 0x760   : > { %v1833_v18 = vmul.f32 %v2178_v45, %v1825_v32 }
 0x762   : > { %v1841_v47 = vmul.f32 %v1996_v5, %v1833_v18 }
 0x764   : > { %v1849_v50 = vadd.f32 %v1997_v42, %v1841_v47 }
 0x766   : > { %v1850_v21 = vpack.c.bf16 %v1849_v50, %v1849_v50 }
 0x768   : > { %1852 = vst.msk [vmem:[%s433_s23] sm:$0xf] %vm1851_vm8, %v1850_v21 }
 0x769 PF: > { %s21_s15 = sadd.s32 1, %s2233_s15   ;;  %s2694_s13 = smov %s2229_s14 }
 0x76a   : > { %p18_p3 = scmp.ge.s32.totalorder %s21_s15, 4   ;;  %s2695_s14 = smov %s2697_s17 }
 0x76c   :  { %20 = sbr.rel (!%p18_p3) target bundleno = 2 (0x2), region = 106 }
 0x773   :  { %1878 = vsyncpa [#allocation7], 1 }
 0x774   :  { %1880 = vsyncpa [#allocation7 + $0x1], 1 }

</bundles_post_ra>
